<compile_context>
chip_gen: v7x
topology: tpu7x:2x2x1
jax: 0.10.0
libtpu: 0.0.40
codegen_flags: <defaults>
</compile_context>

<pallas_src>
import functools

import jax
import jax.numpy as jnp
from jax.experimental import pallas as pl
from jax.experimental.pallas import tpu as pltpu


def _round_up(x, m):
    return (x + m - 1) // m * m


def _tiles_and_pads(n, tm, tk):
    # bf16 packs 16 sublanes per vreg -> keep tm a multiple of 16 (32 if int8 A).
    tm = _round_up(min(tm, _round_up(n, 16)), 16)
    tk = _round_up(min(tk, _round_up(n, 128)), 128)
    n_rows = _round_up(n, tm)
    n_cols = _round_up(n, tk)
    return tm, tk, n_rows, n_cols


def _vmem_limit_bytes(tm, tk, f_agg, fin, fout):
    # Actual double-buffered working set (lane-padded) + headroom; avoids reserving
    # 75% of v7x's 64 MiB VMEM for a kernel that needs ~a quarter of that.
    need = (2 * tm * tk * 2                     # A tile, bf16, double buffered
            + 2 * tk * max(f_agg, 128) * 2      # x_agg tile, bf16
            + 2 * tm * max(fin, 128) * 4        # x_dst tile, f32
            + tm * 128 * 4                      # f32 accumulator scratch
            + 2 * tm * max(fout, 128) * 4       # output tiles
            + (1 << 20))                        # weights / bias / deg / slack
    return int(min(max(2 * need, 16 << 20), 64 << 20))


def _load_a_bf16(a_ref):
    a = a_ref[...]
    if a.dtype != jnp.bfloat16:
        # int8 / fp8 adjacency: upcast on the VPU (plenty of slack in this HBM-bound
        # kernel). Never hand int operands to the MXU (v7x has no int datapath).
        a = a.astype(jnp.bfloat16)
    return a


# ---------------------------------------------------------------------------
# SAGEConv layer 1: aggregation + degree (ones-column fold) + ReLU.
# ---------------------------------------------------------------------------
def _sage1_body(a_ref, xagg_ref, xdst_ref, wneigh_ref, wself_ref, b_ref,
                h_ref, deg_ref, acc_ref, *, f_agg, apply_relu):
    k = pl.program_id(1)

    @pl.when(k == 0)
    def _init():
        acc_ref[...] = jnp.zeros_like(acc_ref)

    # bf16 x bf16 -> f32 MXU matmul over [x_agg | 1]; the trailing ones column folds
    # the in-degree row-sum into the same matmul (no separate XLU reduce).
    acc_ref[...] += jnp.dot(_load_a_bf16(a_ref), xagg_ref[...],
                            preferred_element_type=jnp.float32)

    @pl.when(k == pl.num_programs(1) - 1)
    def _finalize():
        acc = acc_ref[...]
        deg = acc[:, f_agg:f_agg + 1]                 # exact ({0,1} and 1 are exact bf16)
        h_neigh = acc[:, :f_agg] / jnp.maximum(deg, 1.0)
        if wneigh_ref is not None:                    # W_neigh after aggregation (fin <= fout)
            h_neigh = jnp.dot(h_neigh, wneigh_ref[...],
                              preferred_element_type=jnp.float32)
        h = h_neigh + jnp.dot(xdst_ref[...], wself_ref[...],
                              preferred_element_type=jnp.float32) + b_ref[...]
        if apply_relu:
            h = jnp.maximum(h, 0.0)
        h_ref[...] = h.astype(h_ref.dtype)
        deg_ref[...] = deg.astype(deg_ref.dtype)


def sage_layer1(a, x, w_neigh, w_self, b, *, apply_relu=True, tm=512, tk=2048):
    """First SAGEConv('mean'). Returns (h, in_degree); degrees come from the same
    pass over A and are reused by the second layer."""
    n = a.shape[0]
    fin, fout = w_neigh.shape
    lin_before_mp = fin > fout
    x_agg = jnp.dot(x, w_neigh) if lin_before_mp else x
    w_post = None if lin_before_mp else w_neigh
    f_agg = x_agg.shape[1]
    # bf16 aggregation operand (MXU-native) + ones column (degree fold).
    x_agg = jnp.concatenate(
        [x_agg.astype(jnp.bfloat16), jnp.ones((n, 1), jnp.bfloat16)], axis=1)

    tm, tk, n_rows, n_cols = _tiles_and_pads(n, tm, tk)
    a_p = jnp.pad(a, ((0, n_rows - n), (0, n_cols - n)))
    xagg_p = jnp.pad(x_agg, ((0, n_cols - n), (0, 0)))
    xdst_p = jnp.pad(x, ((0, n_rows - n), (0, 0)))

    body = functools.partial(_sage1_body, f_agg=f_agg, apply_relu=apply_relu)
    if w_post is not None:
        def kernel(a_ref, xagg_ref, xdst_ref, wneigh_ref, wself_ref, b_ref,
                   h_ref, deg_ref, acc_ref):
            body(a_ref, xagg_ref, xdst_ref, wneigh_ref, wself_ref, b_ref,
                 h_ref, deg_ref, acc_ref)
    else:
        def kernel(a_ref, xagg_ref, xdst_ref, wself_ref, b_ref,
                   h_ref, deg_ref, acc_ref):
            body(a_ref, xagg_ref, xdst_ref, None, wself_ref, b_ref,
                 h_ref, deg_ref, acc_ref)

    in_specs = [
        pl.BlockSpec((tm, tk), lambda i, k: (i, k)),           # A tile (bf16/int8)
        pl.BlockSpec((tk, f_agg + 1), lambda i, k: (k, 0)),    # [x_agg | 1] (bf16)
        pl.BlockSpec((tm, fin), lambda i, k: (i, 0)),          # x_dst (fc_self, f32)
    ]
    inputs = [a_p, xagg_p, xdst_p]
    if w_post is not None:
        in_specs.append(pl.BlockSpec((f_agg, fout), lambda i, k: (0, 0)))
        inputs.append(w_post)
    in_specs += [pl.BlockSpec((fin, fout), lambda i, k: (0, 0)),
                 pl.BlockSpec((1, fout), lambda i, k: (0, 0))]
    inputs += [w_self, b]

    h, deg = pl.pallas_call(
        kernel,
        out_shape=(jax.ShapeDtypeStruct((n_rows, fout), x.dtype),
                   jax.ShapeDtypeStruct((n_rows, 1), jnp.float32)),
        grid_spec=pltpu.PrefetchScalarGridSpec(
            num_scalar_prefetch=0,
            grid=(n_rows // tm, n_cols // tk),          # dst tiles x src (reduction) tiles
            in_specs=in_specs,
            out_specs=(pl.BlockSpec((tm, fout), lambda i, k: (i, 0)),
                       pl.BlockSpec((tm, 1), lambda i, k: (i, 0))),
            scratch_shapes=[pltpu.VMEM((tm, f_agg + 1), jnp.float32)],
        ),
        compiler_params=pltpu.CompilerParams(
            dimension_semantics=("parallel", "arbitrary"),
            vmem_limit_bytes=_vmem_limit_bytes(tm, tk, f_agg + 1, fin, fout),
        ),
    )(*inputs)
    return h[:n], deg[:n]


# ---------------------------------------------------------------------------
# SAGEConv layer 2 with the MLPPredictor projections fused into the finalize:
#   pq = (mean_neigh [@ W_neigh] + h @ W_self + b) @ [W_u || W_v] + [b_pred || 0]
# ---------------------------------------------------------------------------
def _sage2_body(a_ref, xagg_ref, xdst_ref, deg_ref, wneigh_ref, wself_ref, b_ref,
                wpq_ref, bpq_ref, pq_ref, acc_ref):
    k = pl.program_id(1)

    @pl.when(k == 0)
    def _init():
        acc_ref[...] = jnp.zeros_like(acc_ref)

    acc_ref[...] += jnp.dot(_load_a_bf16(a_ref), xagg_ref[...],
                            preferred_element_type=jnp.float32)

    @pl.when(k == pl.num_programs(1) - 1)
    def _finalize():
        h_neigh = acc_ref[...] / jnp.maximum(deg_ref[...], 1.0)   # deg reused from layer 1
        if wneigh_ref is not None:
            h_neigh = jnp.dot(h_neigh, wneigh_ref[...],
                              preferred_element_type=jnp.float32)
        h = h_neigh + jnp.dot(xdst_ref[...], wself_ref[...],
                              preferred_element_type=jnp.float32) + b_ref[...]
        # Per-node MLPPredictor projections; edge score = pq[src, :C] + pq[dst, C:].
        pq_ref[...] = (jnp.dot(h, wpq_ref[...], preferred_element_type=jnp.float32)
                       + bpq_ref[...]).astype(pq_ref.dtype)


def sage_layer2_with_pred(a, x, deg, w_neigh, w_self, b, wp_u, wp_v, bp,
                          *, tm=512, tk=2048):
    n = a.shape[0]
    fin, fout = w_neigh.shape
    lin_before_mp = fin > fout
    x_agg = jnp.dot(x, w_neigh) if lin_before_mp else x
    w_post = None if lin_before_mp else w_neigh
    f_agg = x_agg.shape[1]
    x_agg = x_agg.astype(jnp.bfloat16)

    c = wp_u.shape[1]
    wpq = jnp.concatenate([wp_u, wp_v], axis=1)               # (fout, 2C)
    bpq = jnp.concatenate([bp, jnp.zeros_like(bp)], axis=1)   # bias counted once per edge

    tm, tk, n_rows, n_cols = _tiles_and_pads(n, tm, tk)
    a_p = jnp.pad(a, ((0, n_rows - n), (0, n_cols - n)))
    xagg_p = jnp.pad(x_agg, ((0, n_cols - n), (0, 0)))
    xdst_p = jnp.pad(x, ((0, n_rows - n), (0, 0)))
    deg_p = jnp.pad(deg, ((0, n_rows - n), (0, 0)))

    if w_post is not None:
        def kernel(a_ref, xagg_ref, xdst_ref, deg_ref, wneigh_ref, wself_ref,
                   b_ref, wpq_ref, bpq_ref, pq_ref, acc_ref):
            _sage2_body(a_ref, xagg_ref, xdst_ref, deg_ref, wneigh_ref,
                        wself_ref, b_ref, wpq_ref, bpq_ref, pq_ref, acc_ref)
    else:
        def kernel(a_ref, xagg_ref, xdst_ref, deg_ref, wself_ref,
                   b_ref, wpq_ref, bpq_ref, pq_ref, acc_ref):
            _sage2_body(a_ref, xagg_ref, xdst_ref, deg_ref, None,
                        wself_ref, b_ref, wpq_ref, bpq_ref, pq_ref, acc_ref)

    in_specs = [
        pl.BlockSpec((tm, tk), lambda i, k: (i, k)),          # A tile
        pl.BlockSpec((tk, f_agg), lambda i, k: (k, 0)),       # x_agg (bf16)
        pl.BlockSpec((tm, fin), lambda i, k: (i, 0)),         # x_dst (f32)
        pl.BlockSpec((tm, 1), lambda i, k: (i, 0)),           # in-degree (from layer 1)
    ]
    inputs = [a_p, xagg_p, xdst_p, deg_p]
    if w_post is not None:
        in_specs.append(pl.BlockSpec((f_agg, fout), lambda i, k: (0, 0)))
        inputs.append(w_post)
    in_specs += [pl.BlockSpec((fin, fout), lambda i, k: (0, 0)),
                 pl.BlockSpec((1, fout), lambda i, k: (0, 0)),
                 pl.BlockSpec((fout, 2 * c), lambda i, k: (0, 0)),
                 pl.BlockSpec((1, 2 * c), lambda i, k: (0, 0))]
    inputs += [w_self, b, wpq, bpq]

    pq = pl.pallas_call(
        kernel,
        out_shape=jax.ShapeDtypeStruct((n_rows, 2 * c), x.dtype),
        grid_spec=pltpu.PrefetchScalarGridSpec(
            num_scalar_prefetch=0,
            grid=(n_rows // tm, n_cols // tk),
            in_specs=in_specs,
            out_specs=pl.BlockSpec((tm, 2 * c), lambda i, k: (i, 0)),
            scratch_shapes=[pltpu.VMEM((tm, f_agg), jnp.float32)],
        ),
        compiler_params=pltpu.CompilerParams(
            dimension_semantics=("parallel", "arbitrary"),
            vmem_limit_bytes=_vmem_limit_bytes(tm, tk, f_agg, fin, 2 * c),
        ),
    )(*inputs)
    return pq[:n]


# ---------------------------------------------------------------------------
# LinkPredModelMultiOutput.forward
# ---------------------------------------------------------------------------
def link_pred_forward(a_narrow, src_ids, dst_ids, x, params, *, tm=512, tk=2048):
    """Per-directed-edge scores.  `a_narrow` is the cached narrow-dtype dense
    adjacency (bf16 / int8), cast once at graph-construction time, NOT per forward."""
    h, deg = sage_layer1(a_narrow, x, params["w1_neigh"], params["w1_self"],
                         params["b1"], apply_relu=True, tm=tm, tk=tk)
    pq = sage_layer2_with_pred(a_narrow, h, deg, params["w2_neigh"],
                               params["w2_self"], params["b2"],
                               params["wp_u"], params["wp_v"], params["bp"],
                               tm=tm, tk=tk)
    c = params["wp_u"].shape[1]
    # Edge stage = pure gather + VPU add (predictor matmuls + bias already fused
    # into the layer-2 Pallas finalize above).
    # TODO(synk): for huge edge lists, gather in-kernel via scalar-prefetched edge ids.
    return pq[src_ids, :c] + pq[dst_ids, c:]


# ---------------------------------------------------------------------------
# Pure-JAX references (SAGEConv-mean x2 + edge MLP)
# ---------------------------------------------------------------------------
def _reference(a, src_ids, dst_ids, x, params, *, agg_dtype=jnp.float32):
    """agg_dtype=bf16 mirrors the kernel's bf16 aggregation operand exactly
    ({0,1} adjacency keeps the matmul itself exact)."""
    def rnd(t):
        return t.astype(agg_dtype).astype(jnp.float32)

    deg = jnp.maximum(a.sum(axis=1, keepdims=True), 1.0)
    h = ((a @ rnd(x)) / deg) @ params["w1_neigh"] + x @ params["w1_self"] + params["b1"]
    h = jnp.maximum(h, 0.0)
    h = (a @ rnd(h @ params["w2_neigh"])) / deg + h @ params["w2_self"] + params["b2"]
    h_u, h_v = h[src_ids], h[dst_ids]
    return h_u @ params["wp_u"] + h_v @ params["wp_v"] + params["bp"]


if __name__ == "__main__":
    N = 256                                   # nodes (small, but exercises tiling)
    IN_FEATS, HID_FEATS, OUT_FEATS, OUT_CLASSES = 16, 32, 16, 8

    key = jax.random.PRNGKey(0)
    (k_a, k_x, k1, k2, k3, k4, k5, kb1, kb2, kbp) = jax.random.split(key, 10)

    # Deterministic random graph: symmetric random edges + a ring (in-degree >= 1),
    # no self loops.
    rand = jax.random.bernoulli(k_a, 0.05, (N, N)).astype(jnp.float32)
    a = jnp.maximum(rand, rand.T)
    ring = jnp.eye(N, k=1) + jnp.eye(N, k=-1)
    ring = ring.at[0, N - 1].set(1.0).at[N - 1, 0].set(1.0)
    a = jnp.minimum(a + ring, 1.0)
    a = a * (1.0 - jnp.eye(N))

    # Cache the narrow-dtype adjacency ONCE (perf feedback: keep the cast out of the
    # jitted forward).  {0,1} -> bf16 is lossless.
    a_bf = a.astype(jnp.bfloat16)

    # Edge list: A[dst, src] = 1  <=>  directed edge src -> dst.
    dst_ids, src_ids = jnp.nonzero(a)
    src_ids = src_ids.astype(jnp.int32)
    dst_ids = dst_ids.astype(jnp.int32)

    x = jax.random.normal(k_x, (N, IN_FEATS), jnp.float32)

    def xavier(k, fan_in, fan_out):
        lim = (6.0 / (fan_in + fan_out)) ** 0.5
        return jax.random.uniform(k, (fan_in, fan_out), jnp.float32, -lim, lim)

    wp = xavier(k5, 2 * OUT_FEATS, OUT_CLASSES)       # Linear(2*out_features, classes)
    params = {
        # SAGEConv 1 (in -> hid)
        "w1_neigh": xavier(k1, IN_FEATS, HID_FEATS),
        "w1_self": xavier(k2, IN_FEATS, HID_FEATS),
        "b1": 0.1 * jax.random.normal(kb1, (1, HID_FEATS), jnp.float32),
        # SAGEConv 2 (hid -> out)
        "w2_neigh": xavier(k3, HID_FEATS, OUT_FEATS),
        "w2_self": xavier(k4, HID_FEATS, OUT_FEATS),
        "b2": 0.1 * jax.random.normal(kb2, (1, OUT_FEATS), jnp.float32),
        # MLPPredictor: concat weight split into src / dst halves (exact).
        "wp_u": wp[:OUT_FEATS],
        "wp_v": wp[OUT_FEATS:],
        "bp": 0.1 * jax.random.normal(kbp, (1, OUT_CLASSES), jnp.float32),
    }

    # tm=tk=128 at N=256 -> 2x2 grid, exercising the accumulate / finalize path and
    # both TC sharding; production defaults are tm=512, tk=2048.
    fwd = jax.jit(functools.partial(link_pred_forward, tm=128, tk=128))
    out = jax.block_until_ready(fwd(a_bf, src_ids, dst_ids, x, params))

    with jax.default_matmul_precision("highest"):
        ref_match = _reference(a, src_ids, dst_ids, x, params, agg_dtype=jnp.bfloat16)
        ref_f32 = _reference(a, src_ids, dst_ids, x, params, agg_dtype=jnp.float32)

    assert out.shape == (src_ids.shape[0], OUT_CLASSES)
    # Tight check vs the reference that mirrors the kernel's bf16 aggregation operand.
    assert jnp.allclose(out, ref_match, atol=1e-3, rtol=1e-3), float(
        jnp.max(jnp.abs(out - ref_match)))
    # Sanity check vs the pure-f32 original math (bf16 feature rounding ~1e-3 rel).
    assert jnp.allclose(out, ref_f32, atol=2e-2, rtol=2e-2), float(
        jnp.max(jnp.abs(out - ref_f32)))
    print("KERNEL_OK")
</pallas_src>

<mosaic_0001>
module attributes {stable_mosaic.version = 11 : i64} {
  func.func @kernel(%arg0: i32, %arg1: i32, %arg2: memref<128x128xbf16, #tpu.memory_space<vmem>>, %arg3: memref<128x17xbf16, #tpu.memory_space<vmem>>, %arg4: memref<128x16xf32, #tpu.memory_space<vmem>>, %arg5: memref<16x32xf32, #tpu.memory_space<vmem>>, %arg6: memref<16x32xf32, #tpu.memory_space<vmem>>, %arg7: memref<1x32xf32, #tpu.memory_space<vmem>>, %arg8: memref<128x32xf32, #tpu.memory_space<vmem>>, %arg9: memref<128x1xf32, #tpu.memory_space<vmem>>, %arg10: memref<128x17xf32, #tpu.memory_space<vmem>>) attributes {dimension_semantics = [#tpu.dimension_semantics<parallel>, #tpu.dimension_semantics<arbitrary>], iteration_bounds = array<i64: 2, 2>, scalar_prefetch = 0 : i64, scratch_operands = 1 : i64, tpu.core_type = #tpu.core_type<tc>, window_params = [{transform_indices = @transform_0, window_bounds = array<i64: 128, 128>}, {transform_indices = @transform_1, window_bounds = array<i64: 128, 17>}, {transform_indices = @transform_2, window_bounds = array<i64: 128, 16>}, {pipeline_mode = #tpu.pipeline_mode<synchronous>, transform_indices = @transform_3, window_bounds = array<i64: 16, 32>}, {pipeline_mode = #tpu.pipeline_mode<synchronous>, transform_indices = @transform_4, window_bounds = array<i64: 16, 32>}, {pipeline_mode = #tpu.pipeline_mode<synchronous>, transform_indices = @transform_5, window_bounds = array<i64: 1, 32>}, {transform_indices = @transform_6, window_bounds = array<i64: 128, 32>}, {transform_indices = @transform_7, window_bounds = array<i64: 128, 1>}]} {
    %c0_i32 = arith.constant 0 : i32
    %0 = arith.cmpi eq, %arg1, %c0_i32 : i32
    %1 = arith.extui %0 : i1 to i32
    %c0_i32_0 = arith.constant 0 : i32
    %2 = arith.cmpi ne, %1, %c0_i32_0 : i32
    scf.if %2 {
      %cst_9 = arith.constant 0.000000e+00 : f32
      %12 = vector.broadcast %cst_9 : f32 to vector<128x17xf32>
      %c0_10 = arith.constant 0 : index
      %c0_11 = arith.constant 0 : index
      %13 = vector.load %arg10[%c0_10, %c0_11] : memref<128x17xf32, #tpu.memory_space<vmem>>, vector<128x17xf32>
      tpu.vector_store %arg10[%c0_10, %c0_11], %12 {strides = array<i32>} : memref<128x17xf32, #tpu.memory_space<vmem>>, vector<128x17xf32>,
    } else {
    }
    %c0 = arith.constant 0 : index
    %c0_1 = arith.constant 0 : index
    %3 = vector.load %arg10[%c0, %c0_1] : memref<128x17xf32, #tpu.memory_space<vmem>>, vector<128x17xf32>
    %c0_2 = arith.constant 0 : index
    %c0_3 = arith.constant 0 : index
    %4 = vector.load %arg2[%c0_2, %c0_3] : memref<128x128xbf16, #tpu.memory_space<vmem>>, vector<128x128xbf16>
    %c0_4 = arith.constant 0 : index
    %c0_5 = arith.constant 0 : index
    %5 = vector.load %arg3[%c0_4, %c0_5] : memref<128x17xbf16, #tpu.memory_space<vmem>>, vector<128x17xbf16>
    %cst = arith.constant dense<0.000000e+00> : vector<128x17xf32>
    %6 = tpu.matmul %4, %5, %cst {dimension_numbers = #tpu.dot_dimension_numbers<[1], [0], [0], [1], [0, 0, 1, 1], [], []>} : vector<128x128xbf16>, vector<128x17xbf16>, vector<128x17xf32> -> vector<128x17xf32>
    %7 = arith.addf %3, %6 : vector<128x17xf32>
    %c0_6 = arith.constant 0 : index
    %c0_7 = arith.constant 0 : index
    %8 = vector.load %arg10[%c0_6, %c0_7] : memref<128x17xf32, #tpu.memory_space<vmem>>, vector<128x17xf32>
    tpu.vector_store %arg10[%c0_6, %c0_7], %7 {strides = array<i32>} : memref<128x17xf32, #tpu.memory_space<vmem>>, vector<128x17xf32>,
    %c1_i32 = arith.constant 1 : i32
    %9 = arith.cmpi eq, %arg1, %c1_i32 : i32
    %10 = arith.extui %9 : i1 to i32
    %c0_i32_8 = arith.constant 0 : i32
    %11 = arith.cmpi ne, %10, %c0_i32_8 : i32
    scf.if %11 {
      %c0_9 = arith.constant 0 : index
      %c0_10 = arith.constant 0 : index
      %12 = vector.load %arg10[%c0_9, %c0_10] : memref<128x17xf32, #tpu.memory_space<vmem>>, vector<128x17xf32>
      %13 = vector.extract_strided_slice %12 {offsets = [0, 16], sizes = [128, 1], strides = [1, 1]} : vector<128x17xf32> to vector<128x1xf32>
      %14 = vector.extract_strided_slice %12 {offsets = [0, 0], sizes = [128, 16], strides = [1, 1]} : vector<128x17xf32> to vector<128x16xf32>
      %cst_11 = arith.constant 1.000000e+00 : f32
      %15 = vector.broadcast %cst_11 : f32 to vector<128x1xf32>
      %16 = arith.maximumf %13, %15 : vector<128x1xf32>
      %17 = vector.broadcast %16 : vector<128x1xf32> to vector<128x16xf32>
      %18 = arith.divf %14, %17 : vector<128x16xf32>
      %c0_12 = arith.constant 0 : index
      %c0_13 = arith.constant 0 : index
      %19 = vector.load %arg5[%c0_12, %c0_13] : memref<16x32xf32, #tpu.memory_space<vmem>>, vector<16x32xf32>
      %cst_14 = arith.constant dense<0.000000e+00> : vector<128x32xf32>
      %20 = tpu.matmul %18, %19, %cst_14 {dimension_numbers = #tpu.dot_dimension_numbers<[1], [0], [0], [1], [0, 0, 1, 1], [], []>} : vector<128x16xf32>, vector<16x32xf32>, vector<128x32xf32> -> vector<128x32xf32>
      %c0_15 = arith.constant 0 : index
      %c0_16 = arith.constant 0 : index
      %21 = vector.load %arg4[%c0_15, %c0_16] : memref<128x16xf32, #tpu.memory_space<vmem>>, vector<128x16xf32>
      %c0_17 = arith.constant 0 : index
      %c0_18 = arith.constant 0 : index
      %22 = vector.load %arg6[%c0_17, %c0_18] : memref<16x32xf32, #tpu.memory_space<vmem>>, vector<16x32xf32>
      %cst_19 = arith.constant dense<0.000000e+00> : vector<128x32xf32>
      %23 = tpu.matmul %21, %22, %cst_19 {dimension_numbers = #tpu.dot_dimension_numbers<[1], [0], [0], [1], [0, 0, 1, 1], [], []>} : vector<128x16xf32>, vector<16x32xf32>, vector<128x32xf32> -> vector<128x32xf32>
      %24 = arith.addf %20, %23 : vector<128x32xf32>
      %c0_20 = arith.constant 0 : index
      %c0_21 = arith.constant 0 : index
      %25 = vector.load %arg7[%c0_20, %c0_21] : memref<1x32xf32, #tpu.memory_space<vmem>>, vector<1x32xf32>
      %26 = vector.broadcast %25 : vector<1x32xf32> to vector<128x32xf32>
      %27 = arith.addf %24, %26 : vector<128x32xf32>
      %cst_22 = arith.constant 0.000000e+00 : f32
      %28 = vector.broadcast %cst_22 : f32 to vector<128x32xf32>
      %29 = arith.maximumf %27, %28 : vector<128x32xf32>
      %c0_23 = arith.constant 0 : index
      %c0_24 = arith.constant 0 : index
      %30 = vector.load %arg8[%c0_23, %c0_24] : memref<128x32xf32, #tpu.memory_space<vmem>>, vector<128x32xf32>
      tpu.vector_store %arg8[%c0_23, %c0_24], %29 {strides = array<i32>} : memref<128x32xf32, #tpu.memory_space<vmem>>, vector<128x32xf32>,
      %c0_25 = arith.constant 0 : index
      %c0_26 = arith.constant 0 : index
      %31 = vector.load %arg9[%c0_25, %c0_26] : memref<128x1xf32, #tpu.memory_space<vmem>>, vector<128x1xf32>
      tpu.vector_store %arg9[%c0_25, %c0_26], %13 {strides = array<i32>} : memref<128x1xf32, #tpu.memory_space<vmem>>, vector<128x1xf32>,
    } else {
    }
    return
  }
  func.func @transform_0(%arg0: i32, %arg1: i32) -> (i32, i32) {
    %c0_i32 = arith.constant 0 : i32
    return %arg0, %arg1 : i32, i32
  }
  func.func @transform_1(%arg0: i32, %arg1: i32) -> (i32, i32) {
    %c0_i32 = arith.constant 0 : i32
    %c0_i32_0 = arith.constant 0 : i32
    return %arg1, %c0_i32 : i32, i32
  }
  func.func @transform_2(%arg0: i32, %arg1: i32) -> (i32, i32) {
    %c0_i32 = arith.constant 0 : i32
    %c0_i32_0 = arith.constant 0 : i32
    return %arg0, %c0_i32 : i32, i32
  }
  func.func @transform_3(%arg0: i32, %arg1: i32) -> (i32, i32) {
    %c0_i32 = arith.constant 0 : i32
    %c0_i32_0 = arith.constant 0 : i32
    %c0_i32_1 = arith.constant 0 : i32
    return %c0_i32, %c0_i32_0 : i32, i32
  }
  func.func @transform_4(%arg0: i32, %arg1: i32) -> (i32, i32) {
    %c0_i32 = arith.constant 0 : i32
    %c0_i32_0 = arith.constant 0 : i32
    %c0_i32_1 = arith.constant 0 : i32
    return %c0_i32, %c0_i32_0 : i32, i32
  }
  func.func @transform_5(%arg0: i32, %arg1: i32) -> (i32, i32) {
    %c0_i32 = arith.constant 0 : i32
    %c0_i32_0 = arith.constant 0 : i32
    %c0_i32_1 = arith.constant 0 : i32
    return %c0_i32, %c0_i32_0 : i32, i32
  }
  func.func @transform_6(%arg0: i32, %arg1: i32) -> (i32, i32) {
    %c0_i32 = arith.constant 0 : i32
    %c0_i32_0 = arith.constant 0 : i32
    return %arg0, %c0_i32 : i32, i32
  }
  func.func @transform_7(%arg0: i32, %arg1: i32) -> (i32, i32) {
    %c0_i32 = arith.constant 0 : i32
    %c0_i32_0 = arith.constant 0 : i32
    return %arg0, %c0_i32 : i32, i32
  }
}

module attributes {stable_mosaic.version = 11 : i64} {
  func.func @kernel(%arg0: i32, %arg1: i32, %arg2: memref<128x128xbf16, #tpu.memory_space<vmem>>, %arg3: memref<128x16xbf16, #tpu.memory_space<vmem>>, %arg4: memref<128x32xf32, #tpu.memory_space<vmem>>, %arg5: memref<128x1xf32, #tpu.memory_space<vmem>>, %arg6: memref<32x16xf32, #tpu.memory_space<vmem>>, %arg7: memref<1x16xf32, #tpu.memory_space<vmem>>, %arg8: memref<16x16xf32, #tpu.memory_space<vmem>>, %arg9: memref<1x16xf32, #tpu.memory_space<vmem>>, %arg10: memref<128x16xf32, #tpu.memory_space<vmem>>, %arg11: memref<128x16xf32, #tpu.memory_space<vmem>>) attributes {dimension_semantics = [#tpu.dimension_semantics<parallel>, #tpu.dimension_semantics<arbitrary>], iteration_bounds = array<i64: 2, 2>, scalar_prefetch = 0 : i64, scratch_operands = 1 : i64, tpu.core_type = #tpu.core_type<tc>, window_params = [{transform_indices = @transform_0, window_bounds = array<i64: 128, 128>}, {transform_indices = @transform_1, window_bounds = array<i64: 128, 16>}, {transform_indices = @transform_2, window_bounds = array<i64: 128, 32>}, {transform_indices = @transform_3, window_bounds = array<i64: 128, 1>}, {pipeline_mode = #tpu.pipeline_mode<synchronous>, transform_indices = @transform_4, window_bounds = array<i64: 32, 16>}, {pipeline_mode = #tpu.pipeline_mode<synchronous>, transform_indices = @transform_5, window_bounds = array<i64: 1, 16>}, {pipeline_mode = #tpu.pipeline_mode<synchronous>, transform_indices = @transform_6, window_bounds = array<i64: 16, 16>}, {pipeline_mode = #tpu.pipeline_mode<synchronous>, transform_indices = @transform_7, window_bounds = array<i64: 1, 16>}, {transform_indices = @transform_8, window_bounds = array<i64: 128, 16>}]} {
    %c0_i32 = arith.constant 0 : i32
    %0 = arith.cmpi eq, %arg1, %c0_i32 : i32
    %1 = arith.extui %0 : i1 to i32
    %c0_i32_0 = arith.constant 0 : i32
    %2 = arith.cmpi ne, %1, %c0_i32_0 : i32
    scf.if %2 {
      %cst_9 = arith.constant 0.000000e+00 : f32
      %12 = vector.broadcast %cst_9 : f32 to vector<128x16xf32>
      %c0_10 = arith.constant 0 : index
      %c0_11 = arith.constant 0 : index
      %13 = vector.load %arg11[%c0_10, %c0_11] : memref<128x16xf32, #tpu.memory_space<vmem>>, vector<128x16xf32>
      tpu.vector_store %arg11[%c0_10, %c0_11], %12 {strides = array<i32>} : memref<128x16xf32, #tpu.memory_space<vmem>>, vector<128x16xf32>,
    } else {
    }
    %c0 = arith.constant 0 : index
    %c0_1 = arith.constant 0 : index
    %3 = vector.load %arg11[%c0, %c0_1] : memref<128x16xf32, #tpu.memory_space<vmem>>, vector<128x16xf32>
    %c0_2 = arith.constant 0 : index
    %c0_3 = arith.constant 0 : index
    %4 = vector.load %arg2[%c0_2, %c0_3] : memref<128x128xbf16, #tpu.memory_space<vmem>>, vector<128x128xbf16>
    %c0_4 = arith.constant 0 : index
    %c0_5 = arith.constant 0 : index
    %5 = vector.load %arg3[%c0_4, %c0_5] : memref<128x16xbf16, #tpu.memory_space<vmem>>, vector<128x16xbf16>
    %cst = arith.constant dense<0.000000e+00> : vector<128x16xf32>
    %6 = tpu.matmul %4, %5, %cst {dimension_numbers = #tpu.dot_dimension_numbers<[1], [0], [0], [1], [0, 0, 1, 1], [], []>} : vector<128x128xbf16>, vector<128x16xbf16>, vector<128x16xf32> -> vector<128x16xf32>
    %7 = arith.addf %3, %6 : vector<128x16xf32>
    %c0_6 = arith.constant 0 : index
    %c0_7 = arith.constant 0 : index
    %8 = vector.load %arg11[%c0_6, %c0_7] : memref<128x16xf32, #tpu.memory_space<vmem>>, vector<128x16xf32>
    tpu.vector_store %arg11[%c0_6, %c0_7], %7 {strides = array<i32>} : memref<128x16xf32, #tpu.memory_space<vmem>>, vector<128x16xf32>,
    %c1_i32 = arith.constant 1 : i32
    %9 = arith.cmpi eq, %arg1, %c1_i32 : i32
    %10 = arith.extui %9 : i1 to i32
    %c0_i32_8 = arith.constant 0 : i32
    %11 = arith.cmpi ne, %10, %c0_i32_8 : i32
    scf.if %11 {
      %c0_9 = arith.constant 0 : index
      %c0_10 = arith.constant 0 : index
      %12 = vector.load %arg11[%c0_9, %c0_10] : memref<128x16xf32, #tpu.memory_space<vmem>>, vector<128x16xf32>
      %c0_11 = arith.constant 0 : index
      %c0_12 = arith.constant 0 : index
      %13 = vector.load %arg5[%c0_11, %c0_12] : memref<128x1xf32, #tpu.memory_space<vmem>>, vector<128x1xf32>
      %cst_13 = arith.constant 1.000000e+00 : f32
      %14 = vector.broadcast %cst_13 : f32 to vector<128x1xf32>
      %15 = arith.maximumf %13, %14 : vector<128x1xf32>
      %16 = vector.broadcast %15 : vector<128x1xf32> to vector<128x16xf32>
      %17 = arith.divf %12, %16 : vector<128x16xf32>
      %c0_14 = arith.constant 0 : index
      %c0_15 = arith.constant 0 : index
      %18 = vector.load %arg4[%c0_14, %c0_15] : memref<128x32xf32, #tpu.memory_space<vmem>>, vector<128x32xf32>
      %c0_16 = arith.constant 0 : index
      %c0_17 = arith.constant 0 : index
      %19 = vector.load %arg6[%c0_16, %c0_17] : memref<32x16xf32, #tpu.memory_space<vmem>>, vector<32x16xf32>
      %cst_18 = arith.constant dense<0.000000e+00> : vector<128x16xf32>
      %20 = tpu.matmul %18, %19, %cst_18 {dimension_numbers = #tpu.dot_dimension_numbers<[1], [0], [0], [1], [0, 0, 1, 1], [], []>} : vector<128x32xf32>, vector<32x16xf32>, vector<128x16xf32> -> vector<128x16xf32>
      %21 = arith.addf %17, %20 : vector<128x16xf32>
      %c0_19 = arith.constant 0 : index
      %c0_20 = arith.constant 0 : index
      %22 = vector.load %arg7[%c0_19, %c0_20] : memref<1x16xf32, #tpu.memory_space<vmem>>, vector<1x16xf32>
      %23 = vector.broadcast %22 : vector<1x16xf32> to vector<128x16xf32>
      %24 = arith.addf %21, %23 : vector<128x16xf32>
      %c0_21 = arith.constant 0 : index
      %c0_22 = arith.constant 0 : index
      %25 = vector.load %arg8[%c0_21, %c0_22] : memref<16x16xf32, #tpu.memory_space<vmem>>, vector<16x16xf32>
      %cst_23 = arith.constant dense<0.000000e+00> : vector<128x16xf32>
      %26 = tpu.matmul %24, %25, %cst_23 {dimension_numbers = #tpu.dot_dimension_numbers<[1], [0], [0], [1], [0, 0, 1, 1], [], []>} : vector<128x16xf32>, vector<16x16xf32>, vector<128x16xf32> -> vector<128x16xf32>
      %c0_24 = arith.constant 0 : index
      %c0_25 = arith.constant 0 : index
      %27 = vector.load %arg9[%c0_24, %c0_25] : memref<1x16xf32, #tpu.memory_space<vmem>>, vector<1x16xf32>
      %28 = vector.broadcast %27 : vector<1x16xf32> to vector<128x16xf32>
      %29 = arith.addf %26, %28 : vector<128x16xf32>
      %c0_26 = arith.constant 0 : index
      %c0_27 = arith.constant 0 : index
      %30 = vector.load %arg10[%c0_26, %c0_27] : memref<128x16xf32, #tpu.memory_space<vmem>>, vector<128x16xf32>
      tpu.vector_store %arg10[%c0_26, %c0_27], %29 {strides = array<i32>} : memref<128x16xf32, #tpu.memory_space<vmem>>, vector<128x16xf32>,
    } else {
    }
    return
  }
  func.func @transform_0(%arg0: i32, %arg1: i32) -> (i32, i32) {
    %c0_i32 = arith.constant 0 : i32
    return %arg0, %arg1 : i32, i32
  }
  func.func @transform_1(%arg0: i32, %arg1: i32) -> (i32, i32) {
    %c0_i32 = arith.constant 0 : i32
    %c0_i32_0 = arith.constant 0 : i32
    return %arg1, %c0_i32 : i32, i32
  }
  func.func @transform_2(%arg0: i32, %arg1: i32) -> (i32, i32) {
    %c0_i32 = arith.constant 0 : i32
    %c0_i32_0 = arith.constant 0 : i32
    return %arg0, %c0_i32 : i32, i32
  }
  func.func @transform_3(%arg0: i32, %arg1: i32) -> (i32, i32) {
    %c0_i32 = arith.constant 0 : i32
    %c0_i32_0 = arith.constant 0 : i32
    return %arg0, %c0_i32 : i32, i32
  }
  func.func @transform_4(%arg0: i32, %arg1: i32) -> (i32, i32) {
    %c0_i32 = arith.constant 0 : i32
    %c0_i32_0 = arith.constant 0 : i32
    %c0_i32_1 = arith.constant 0 : i32
    return %c0_i32, %c0_i32_0 : i32, i32
  }
  func.func @transform_5(%arg0: i32, %arg1: i32) -> (i32, i32) {
    %c0_i32 = arith.constant 0 : i32
    %c0_i32_0 = arith.constant 0 : i32
    %c0_i32_1 = arith.constant 0 : i32
    return %c0_i32, %c0_i32_0 : i32, i32
  }
  func.func @transform_6(%arg0: i32, %arg1: i32) -> (i32, i32) {
    %c0_i32 = arith.constant 0 : i32
    %c0_i32_0 = arith.constant 0 : i32
    %c0_i32_1 = arith.constant 0 : i32
    return %c0_i32, %c0_i32_0 : i32, i32
  }
  func.func @transform_7(%arg0: i32, %arg1: i32) -> (i32, i32) {
    %c0_i32 = arith.constant 0 : i32
    %c0_i32_0 = arith.constant 0 : i32
    %c0_i32_1 = arith.constant 0 : i32
    return %c0_i32, %c0_i32_0 : i32, i32
  }
  func.func @transform_8(%arg0: i32, %arg1: i32) -> (i32, i32) {
    %c0_i32 = arith.constant 0 : i32
    %c0_i32_0 = arith.constant 0 : i32
    return %arg0, %c0_i32 : i32, i32
  }
}

</mosaic_0001>

<bundles_post_ra>
// kernel: link_pred_forward.2
= control target key start
LH: loop header
LB: loop body
LE: loop exit
PB: predicated region body
PF: predicated region fallthrough
CT: control target
= control target key end

     0   :  { %s2795_s0 = inlined_call_operand.hbm [shape: bf16[256,256], index: 0, kind: input, shape index: {}]   ;;  %s2796_s1 = inlined_call_operand.vmem [shape: bf16[256,17], index: 1, kind: input, shape index: {}]   ;;  %s2797_s2 = inlined_call_operand.vmem [shape: f32[256,16], index: 2, kind: input, shape index: {}]   ;;  %s2798_s3 = inlined_call_operand.hbm [shape: f32[16,32], index: 3, kind: input, shape index: {}]   ;;  %s2799_s4 = inlined_call_operand.hbm [shape: f32[16,32], index: 4, kind: input, shape index: {}]   ;;  %s2800_s5 = inlined_call_operand.hbm [shape: f32[1,32], index: 5, kind: input, shape index: {}]   ;;  %s2801_s6 = inlined_call_operand.vmem [shape: f32[256,32], index: 6, kind: output, shape index: {0}]   ;;  %s2802_s7 = inlined_call_operand.vmem [shape: f32[256,1], index: 7, kind: output, shape index: {1}]  }
   0x1   :  { %2809 = sst [smem:[#allocation14_spill]] %s2798_s3 }
   0x2   :  { %2810 = sst [smem:[#allocation15_spill]] %s2801_s6 }
   0x3   :  { %2811 = sst [smem:[#allocation16_spill]] %s2802_s7 }
   0x4   :  { %13 = vsyncpa [#allocation4], 0 }
   0x5   :  { %15 = vsyncpa [#allocation4 + $0x1], 0 }
   0x6   :  { %16 = vsyncpa [#allocation6], 0 }
   0x7   :  { %17 = vsyncpa [#allocation9], 0  ;;  %s2231_s24 = smov 0   ;;  %s2233_s25 = smov 0  }
   0x8   :  { %s2235_s26 = smov 0   ;;  %s2237_s27 = smov 0  }
   0x9   :  { %s2239_s28 = smov 0   ;;  %s2241_s29 = smov 0  }
   0xa   :  { %s2243_s30 = smov 0   ;;  %s2245_s8 = smov 0  }
   0xb LB: > { %2812 = sst [smem:[#allocation13_spill]] %s2178_s8  ;;  %s1573_s9 = sadd.s32 4294967295, %s2178_s8   ;;  %s2178_s8 = sphi %s2245_s8, %s23_s8   ;;  %s2174_s30 = sphi %s2243_s30, %s2834_s30   ;;  %s2170_s29 = sphi %s2241_s29, %s2833_s29   ;;  %s2166_s28 = sphi %s2239_s28, %s2832_s28   ;;  %s2162_s27 = sphi %s2237_s27, %s2831_s27   ;;  %s2158_s26 = sphi %s2235_s26, %s2830_s26   ;;  %s2154_s25 = sphi %s2233_s25, %s2829_s25   ;;  %s2150_s24 = sphi %s2231_s24, %s2828_s24  }
   0xc   : > { %p51_p0 = scmp.ne.s32.totalorder %s2158_s26, %s2154_s25  ;;  %p52_p1 = scmp.eq.s32.totalorder %s2178_s8, 0 }
   0xd   : > { %p57_p2 = scmp.ne.s32.totalorder %s2154_s25, %s2150_s24  ;;  %p2275_p3 = scmp.eq.s32.totalorder %s1573_s9, 0 }
   0xe   : > { %p53_p4 = por %p52_p1, %p51_p0  ;;  %p1575_p5 = scmp.ge.s32.totalorder %s2178_s8, 1 }
   0xf   : > { %s2813_s11 = scalar_select %p2275_p3, 1, 0 }
  0x10   : > { %p2282_p6 = por %p2275_p3, %p57_p2  ;;  %p235_p7 = scmp.lt.s32.totalorder %s2178_s8, 5 }
  0x11   : > { %s2180_s14 = smov [#allocation5]   ;;  %p1862_p10 = scmp.lt.s32.totalorder %s2178_s8, 4 }
  0x12   : > { %s2814_s12 = scalar_select %p2282_p6, 1, 0 }
  0x13   : > { %p2287_p8 = pnand %p1575_p5, %p235_p7  ;;  %s247_s15 = sshll.u32 %s2180_s14, 4  ;;  %s2291_s15 = int_to_ptr.vmem [resolvable:$true] %s247_s15 }
  0x14   : > { %p2302_p12 = pnand %p1862_p10, %p53_p4  ;;  %s2181_s18 = smov [#allocation7]  }
  0x15   : > { %s2815_s13 = scalar_select %p2287_p8, 1, 0 }
  0x16   : > { %p1845_p9 = pneg %p2287_p8  ;;  %s260_s19 = sshll.u32 %s2181_s18, 4  ;;  %s2306_s19 = int_to_ptr.vmem [resolvable:$true] %s260_s19 }
  0x17   : > { %s2817_s17 = scalar_select %p2302_p12, 1, 0 }
  0x18   : > { %p2298_p11 = pnand %p1845_p9, %p2275_p3  ;;  %s2818_s3 = sld [smem:[#allocation14_spill]] }
  0x1a   : > { %p2316_p0 = pneg %p2298_p11 }
  0x1e   : > { %s1990_s22 = scalar_lea.hbm %s2818_s3, 256 }
  0x1f   : > { %p1991_p13 = scmp.ne.s32.totalorder %s2818_s3, %s1990_s22  ;;  %p1997_p4 = scmp.lt.u32.totalorder %s1990_s22, %s2818_s3 }
  0x21   : > { %p1993_p1 = pnand %p2316_p0, %p1991_p13 }
  0x23   : > { %p1994_p2 = pneg %p1993_p1 }
  0x25   : > { %p1999_p5 = pnand %p1997_p4, %p1994_p2 }
  0x27   : > { %2002 = shalt.err (!%p1999_p5)
}
  0x28   : > { %s2003_s20 = scalar_lea.vmem %s2291_s15, 256  ;;  %p2011_p3 = scmp.lt.s32.totalorder %s2291_s15, %s2291_s15 }
  0x29   : > { %p2004_p7 = scmp.ne.s32.totalorder %s2291_s15, %s2003_s20  ;;  %p2012_p6 = scmp.lt.s32.totalorder %s2003_s20, %s2003_s20 }
  0x2b   : > { %p2006_p9 = pnand %p2004_p7, %p2316_p0  ;;  %p2013_p13 = por %p2012_p6, %p2011_p3 }
  0x2d   : > { %p2007_p10 = pneg %p2006_p9 }
  0x2f   : > { %p2014_p1 = pnand %p2013_p13, %p2007_p10 }
  0x31   : > { %2017 = shalt.err (!%p2014_p1)
}
  0x32   : > { %s2182_s21 = smov 128   ;;  %s2183_s22 = smov 8  }
  0x33   : > { %1848 = dma.hbm_to_vmem [thread:$0]  (!%p2298_p11), %s2818_s3, 256, %s2291_s15, [#allocation6], %s2182_s21, %s2182_s21, %s2183_s22  }
  0x34   : > { %s2018_s10 = scalar_lea.hbm %s2799_s4, 256 }
  0x35   : > { %p2019_p3 = scmp.ne.s32.totalorder %s2799_s4, %s2018_s10  ;;  %p2025_p4 = scmp.lt.u32.totalorder %s2018_s10, %s2799_s4 }
  0x37   : > { %p2021_p6 = pnand %p2019_p3, %p2316_p0 }
  0x39   : > { %p2022_p2 = pneg %p2021_p6 }
  0x3b   : > { %p2027_p5 = pnand %p2025_p4, %p2022_p2 }
  0x3d   : > { %2030 = shalt.err (!%p2027_p5)
}
  0x3e   : > { %s2031_s15 = scalar_lea.vmem %s2306_s19, 256  ;;  %p2039_p13 = scmp.lt.s32.totalorder %s2306_s19, %s2306_s19 }
  0x3f   : > { %p2032_p7 = scmp.ne.s32.totalorder %s2306_s19, %s2031_s15  ;;  %p2040_p1 = scmp.lt.s32.totalorder %s2031_s15, %s2031_s15 }
  0x41   : > { %p2034_p9 = pnand %p2032_p7, %p2316_p0  ;;  %p2041_p3 = por %p2040_p1, %p2039_p13 }
  0x43   : > { %p2035_p10 = pneg %p2034_p9 }
  0x45   : > { %p2042_p6 = pnand %p2041_p3, %p2035_p10 }
  0x47   : > { %2045 = shalt.err (!%p2042_p6)
}
  0x48   : > { %1851 = dma.hbm_to_vmem [thread:$0]  (!%p2298_p11), %s2799_s4, 256, %s2306_s19, [#allocation6], %s2182_s21, %s2182_s21, %s2183_s22  }
  0x49   : > { %s2184_s8 = smov [#allocation8]   ;;  %s2046_s14 = scalar_lea.hbm %s2800_s5, 16 }
  0x4a   : > { %s274_s10 = sshll.u32 %s2184_s8, 4  ;;  %p2047_p2 = scmp.ne.s32.totalorder %s2800_s5, %s2046_s14  ;;  %s275_s10 = int_to_ptr.vmem [resolvable:$true] %s274_s10 }
  0x4b   : > { %p2053_p7 = scmp.lt.u32.totalorder %s2046_s14, %s2800_s5 }
  0x4c   : > { %p2049_p4 = pnand %p2047_p2, %p2316_p0 }
  0x4e   : > { %p2050_p5 = pneg %p2049_p4 }
  0x50   : > { %p2055_p9 = pnand %p2053_p7, %p2050_p5 }
  0x52   : > { %2058 = shalt.err (!%p2055_p9)
}
  0x53   : > { %s2059_s19 = scalar_lea.vmem %s275_s10, 16  ;;  %s2066_s22 = scalar_lea.vmem %s275_s10, 32 }
  0x54   : > { %p2060_p10 = scmp.ne.s32.totalorder %s275_s10, %s2059_s19  ;;  %p2067_p3 = scmp.lt.s32.totalorder %s275_s10, %s275_s10 }
  0x55   : > { %p2068_p6 = scmp.lt.s32.totalorder %s2066_s22, %s2059_s19 }
  0x56   : > { %p2062_p13 = pnand %p2060_p10, %p2316_p0 }
  0x57   : > { %p2069_p8 = por %p2068_p6, %p2067_p3 }
  0x58   : > { %p2063_p1 = pneg %p2062_p13 }
  0x5a   : > { %p2070_p12 = pnand %p2069_p8, %p2063_p1 }
  0x5c   : > { %2073 = shalt.err (!%p2070_p12)
}
  0x5d   : > { %1854 = dma.hbm_to_vmem [thread:$0]  (!%p2298_p11), %s2800_s5, 16, %s275_s10, [#allocation9]  }
  0x5e   : > { %s32_s3 = sadd.s32 1, %s2170_s29  ;;  %s35_s9 = sadd.s32 1, %s2174_s30 }
  0x5f   : > { %p33_p0 = scmp.ge.s32.totalorder %s32_s3, 2  ;;  %s285_s8 = sand.u32 1, %s2158_s26  }
  0x60   : > { %s1580_s23 = sshll.u32 %s285_s8, 6  ;;  %s1650_s24 = sshll.u32 %s2174_s30, 5 }
  0x61   : > { %s2836_s3 = smov (%p33_p0, %s32_s3), 0  ;;  %s2838_s9 = smov (!%p33_p0, %s35_s9), %s2174_s30 }
  0x62   : > { %s40_s16 = ssub.s32 %s2170_s29, %s2836_s3  ;;  %p37_p8 = scmp.ge.s32.totalorder %s2838_s9, 2 }
  0x63   : > { %s295_s14 = sadd.s32 %s2170_s29, %s1650_s24  ;;  %s289_s18 = scalar_lea.vmem [#allocation3], %s1580_s23 }
  0x64   : > { %s298_s20 = sshll.u32 %s289_s18, 4  ;;  %s2840_s9 = smov (%p37_p8, %s2838_s9), 0  ;;  %s2394_s20 = int_to_ptr.vmem [resolvable:$true] %s298_s20 }
  0x65   : > { %s1583_s10 = sshll.u32 %s295_s14, 6  ;;  %s39_s15 = ssub.s32 %s2174_s30, %s2840_s9 }
  0x66   : > { %s2401_s6 = scalar_lea.hbm %s2795_s0, %s1583_s10  ;;  %s2403_s7 = sor.u32 %s40_s16, %s39_s15 }
  0x67   : > { %p42_p11 = scmp.eq.s32.totalorder %s2403_s7, 0  ;;  %s2406_s23 = scalar_lea.sflag [#allocation4], %s285_s8 }
  0x68   : > { %s2074_s24 = scalar_lea.hbm %s2401_s6, 1024  ;;  %p2820_p2 = scmp.ne.s32.totalorder %s2817_s17, 0 }
  0x69   : > { %p2075_p12 = scmp.ne.s32.totalorder %s2401_s6, %s2074_s24  ;;  %s2079_s10 = scalar_lea.hbm %s2795_s0, 4096 }
  0x6a   : > { %p2076_p4 = pneg %p2820_p2  ;;  %p2080_p9 = scmp.lt.u32.totalorder %s2401_s6, %s2795_s0 }
  0x6b   : > { %p2081_p10 = scmp.lt.u32.totalorder %s2079_s10, %s2074_s24  ;;  %p2083_p1 = scmp.lt.u32.totalorder %s2074_s24, %s2401_s6 }
  0x6c   : > { %p2077_p5 = pnand %p2076_p4, %p2075_p12 }
  0x6d   : > { %p2082_p13 = por %p2081_p10, %p2080_p9 }
  0x6e   : > { %p2078_p7 = pneg %p2077_p5 }
  0x6f   : > { %p2084_p3 = por %p2083_p1, %p2082_p13 }
  0x71   : > { %p2085_p6 = pnand %p2084_p3, %p2078_p7 }
  0x73   : > { %2088 = shalt.err (!%p2085_p6)
}
  0x74   : > { %s2089_s8 = scalar_lea.vmem %s2394_s20, 1024  ;;  %s2185_s16 = smov [#allocation3]  }
  0x75   : > { %p2090_p0 = scmp.ne.s32.totalorder %s2394_s20, %s2089_s8  ;;  %s2094_s15 = sshll.u32 %s2185_s16, 4  ;;  %s2095_s15 = int_to_ptr.vmem [resolvable:$false] %s2094_s15 }
  0x76   : > { %s2096_s14 = scalar_lea.vmem %s2095_s15, 2048  ;;  %p2097_p5 = scmp.lt.s32.totalorder %s2394_s20, %s2095_s15 }
  0x77   : > { %p2092_p8 = pnand %p2090_p0, %p2076_p4  ;;  %p2098_p9 = scmp.lt.s32.totalorder %s2096_s14, %s2089_s8 }
  0x79   : > { %p2093_p12 = pneg %p2092_p8  ;;  %p2099_p10 = por %p2098_p9, %p2097_p5 }
  0x7b   : > { %p2100_p13 = pnand %p2099_p10, %p2093_p12 }
  0x7d   : > { %2103 = shalt.err (!%p2100_p13)
}
  0x7e   : > { %s2186_s24 = smov 64   ;;  %s2187_s18 = smov 4  }
  0x7f   : > { %1858 = dma.hbm_to_vmem [thread:$0]  (!%p2820_p2), %s2401_s6, 1024, %s2394_s20, %s2406_s23, %s2182_s21, %s2186_s24, %s2187_s18  }
  0x80   : > { %s2821_s10 = sadd.s32 1, %s2158_s26  ;;  %p2822_p4 = scmp.ne.s32.totalorder %s2815_s13, 0 }
  0x81   : > { %s2440_s19 = scalar_select %p42_p11, %s2158_s26, %s2821_s10  }
  0x82   : > { %328 = sbr.rel (%p2822_p4) target bundleno = 810 (0x32a), region = 44  ;;  %s330_s22 = sand.u32 (!%p2822_p4), 1, %s2154_s25  }
  0x83   : > { %s1585_s8 = sshll.u32 (!%p2822_p4), %s330_s22, 6  ;;  %s331_s16 = scalar_lea.sflag (!%p2822_p4), [#allocation4], %s330_s22 }
  0x84   : > { %s2445_s15 = scalar_lea.vmem (!%p2822_p4), [#allocation3], %s1585_s8  ;;  %p2823_p7 = scmp.ne.s32.totalorder (!%p2822_p4), %s2814_s12, 0 }
  0x89   : > { %2137 = dma.done.wait (%p2823_p7), %s331_s16, 1024  }
  0x8a   : > { %2139 = vsyncadd (%p2823_p7), %s331_s16, 4294966272  ;;  %p2824_p2 = scmp.ne.s32.totalorder %s2813_s11, 0 }
  0x8c   : > { %2141 = dma.done.wait (%p2824_p2), [#allocation6], 512  }
  0x8d   : > { %2143 = vsyncadd (%p2824_p2), [#allocation6], 4294966784 }
  0x8e   : > { %2145 = dma.done.wait (%p2824_p2), [#allocation9], 16  }
  0x8f   : > { %2147 = vsyncadd (%p2824_p2), [#allocation9], 4294967280  ;;  %s1589_s13 = sshll.u32 %s2162_s27, 4  ;;  %s1591_s17 = sshll.u32 %s2166_s28, 4 }
  0x90   : > { %p394_p11 = scmp.lt.s32.totalorder %s1589_s13, 31  ;;  %p400_p1 = scmp.lt.s32.totalorder %s1591_s17, 31 }
  0x91   : > { %s2825_s10 = sld [smem:[#allocation15_spill]]  ;;  %s2826_s16 = sld [smem:[#allocation16_spill]] }
  0x92   : > { %s2842_s13 = smov (!%p394_p11, %s1589_s13), 31  ;;  %s2844_s17 = smov (!%p400_p1, %s1591_s17), 31 }
  0x93   : > { %s1590_s12 = sshll.u32 %s2842_s13, 2  ;;  %s1592_s7 = sshll.u32 %s2844_s17, 3 }
  0x94   : > { %s2464_s6 = scalar_lea.vmem %s2796_s1, %s1590_s12  ;;  %s2469_s11 = scalar_lea.vmem %s2797_s2, %s1592_s7 }
  0x95   : > { %p1597_p3 = scmp.ne.s32.totalorder %s2162_s27, 0 }
  0x96   : > { %vm422_vm0 = vcmask (!%p1597_p3), 138240   ;;  %v2188_v0 = vmov (!%p1597_p3), 0.0  }
  0x97   : > { %s2474_s28 = scalar_lea.vmem %s2825_s10, %s1592_s7  ;;  %s2479_s13 = scalar_lea.vmem %s2826_s16, %s1592_s7  ;;  %423 = vst.msk [vmem:[#allocation2] sm:$0xff] (!%p1597_p3), %vm422_vm0, %v2188_v0  ;;  %424 = vst.msk [vmem:[#allocation2 + $0x8] sm:$0xff] (!%p1597_p3), %vm422_vm0, %v2188_v0 }
  0x98   : > { %421 = sbr.rel (%p1597_p3) target bundleno = 159 (0x9f), region = 64  ;;  %425 = vst.msk [vmem:[#allocation2 + $0x10] sm:$0xff] (!%p1597_p3), %vm422_vm0, %v2188_v0  ;;  %426 = vst.msk [vmem:[#allocation2 + $0x18] sm:$0xff] (!%p1597_p3), %vm422_vm0, %v2188_v0 }
  0x99   : > { %427 = vst.msk [vmem:[#allocation2 + $0x20] sm:$0xff] (!%p1597_p3), %vm422_vm0, %v2188_v0  ;;  %428 = vst.msk [vmem:[#allocation2 + $0x28] sm:$0xff] (!%p1597_p3), %vm422_vm0, %v2188_v0 }
  0x9a   : > { %429 = vst.msk [vmem:[#allocation2 + $0x30] sm:$0xff] (!%p1597_p3), %vm422_vm0, %v2188_v0  ;;  %430 = vst.msk [vmem:[#allocation2 + $0x38] sm:$0xff] (!%p1597_p3), %vm422_vm0, %v2188_v0 }
  0x9b   : > { %431 = vst.msk [vmem:[#allocation2 + $0x40] sm:$0xff] (!%p1597_p3), %vm422_vm0, %v2188_v0  ;;  %432 = vst.msk [vmem:[#allocation2 + $0x48] sm:$0xff] (!%p1597_p3), %vm422_vm0, %v2188_v0 }
  0x9c   : > { %433 = vst.msk [vmem:[#allocation2 + $0x50] sm:$0xff] (!%p1597_p3), %vm422_vm0, %v2188_v0  ;;  %434 = vst.msk [vmem:[#allocation2 + $0x58] sm:$0xff] (!%p1597_p3), %vm422_vm0, %v2188_v0 }
  0x9d   : > { %435 = vst.msk [vmem:[#allocation2 + $0x60] sm:$0xff] (!%p1597_p3), %vm422_vm0, %v2188_v0  ;;  %436 = vst.msk [vmem:[#allocation2 + $0x68] sm:$0xff] (!%p1597_p3), %vm422_vm0, %v2188_v0 }
  0x9e   : > { %437 = vst.msk [vmem:[#allocation2 + $0x70] sm:$0xff] (!%p1597_p3), %vm422_vm0, %v2188_v0  ;;  %438 = vst.msk [vmem:[#allocation2 + $0x78] sm:$0xff] (!%p1597_p3), %vm422_vm0, %v2188_v0 }
  0x9f PF: > { %v1940_v1 = vld [vmem:[%s2464_s6] sm:$0xff]   ;;  %v1941_v2 = vld [vmem:[%s2464_s6 + $0x8] sm:$0xff]   ;;  %v1942_v3 = vld [vmem:[%s2464_s6 + $0x10] sm:$0xff]   ;;  %vm696_vm1 = vcmask 138240   ;;  %p1614_p6 = scmp.ne.s32.totalorder %s2162_s27, 1 }
  0xa0   : > { %1703 = vmatprep.subr.bf16.mxu0 %v1940_v1  ;;  %1799 = vmatprep.subr.bf16.mxu1 %v1940_v1  ;;  %v1943_v4 = vld [vmem:[%s2464_s6 + $0x18] sm:$0xff]   ;;  %v1948_v5 = vld [vmem:[%s2445_s15] sm:$0xff]   ;;  %v1945_v8 = vld [vmem:[%s2464_s6 + $0x28] sm:$0xff]   ;;  %vm881_vm2 = vcmask (!%p1614_p6), 130048   ;;  %s2190_s27 = smov (!%p1614_p6), 112   ;;  %vm1388_vm3 = vcmask (!%p1614_p6), 7168  }
  0xa1   : > { %1704 = vmatpush3.bf16.msra.mxu0 %v1940_v1  ;;  %1807 = vmatpush3.bf16.msra.mxu1 %v1940_v1  ;;  %v1949_v6 = vld [vmem:[%s2445_s15 + $0x20] sm:$0xff]   ;;  %v1946_v9 = vld [vmem:[%s2464_s6 + $0x30] sm:$0xff]   ;;  %v1947_v10 = vld [vmem:[%s2464_s6 + $0x38] sm:$0xff]   ;;  %vm1307_vm4 = vcmask (!%p1614_p6), 261120  }
  0xa2   : > { %1705 = vmatprep.subr.bf16.mxu0 %v1941_v2  ;;  %1800 = vmatprep.subr.bf16.mxu1 %v1941_v2  ;;  %v1944_v7 = vld [vmem:[%s2464_s6 + $0x20] sm:$0xff]   ;;  %v1950_v11 = vld [vmem:[%s2445_s15 + $0x8] sm:$0xff]   ;;  %v1952_v13 = vld [vmem:[%s2445_s15 + $0x10] sm:$0xff]  }
  0xa3   : > { %1719 = vmatprep.mubr.bf16.mxu0 %v1948_v5  ;;  %1727 = vmatprep.mubr.bf16.mxu1 %v1949_v6  ;;  %v1951_v12 = vld [vmem:[%s2445_s15 + $0x28] sm:$0xff]   ;;  %v1953_v14 = vld [vmem:[%s2445_s15 + $0x30] sm:$0xff]   ;;  %v1954_v15 = vld [vmem:[%s2445_s15 + $0x18] sm:$0xff]  }
  0xa4   : > { %v1955_v16 = vld [vmem:[%s2445_s15 + $0x38] sm:$0xff]   ;;  %v441_v17 = vld [vmem:[#allocation2 + $0x10] sm:$0xff]  ;;  %v439_v19 = vld [vmem:[#allocation2] sm:$0xff] }
  0xa5   : > { %1706 = vmatpush3.bf16.msra.mxu0 %v1941_v2  ;;  %1808 = vmatpush3.bf16.msra.mxu1 %v1941_v2  ;;  %v449_v18 = vld [vmem:[#allocation2 + $0x50] sm:$0xff]  ;;  %v447_v20 = vld [vmem:[#allocation2 + $0x40] sm:$0xff]  ;;  %v442_v23 = vld [vmem:[#allocation2 + $0x18] sm:$0xff] }
  0xa6   : > { %1707 = vmatprep.subr.bf16.mxu0 %v1942_v3  ;;  %1801 = vmatprep.subr.bf16.mxu1 %v1942_v3  ;;  %v450_v24 = vld [vmem:[#allocation2 + $0x58] sm:$0xff]  ;;  %v440_v29 = vld [vmem:[#allocation2 + $0x8] sm:$0xff]  ;;  %v445_v41 = vld [vmem:[#allocation2 + $0x30] sm:$0xff] }
  0xa7   : > { %v448_v30 = vld [vmem:[#allocation2 + $0x48] sm:$0xff]  ;;  %v453_v42 = vld [vmem:[#allocation2 + $0x70] sm:$0xff]  ;;  %v443_v43 = vld [vmem:[#allocation2 + $0x20] sm:$0xff] }
  0xa8   : > { %v451_v44 = vld [vmem:[#allocation2 + $0x60] sm:$0xff]  ;;  %v446_v47 = vld [vmem:[#allocation2 + $0x38] sm:$0xff]  ;;  %v444_v53 = vld [vmem:[#allocation2 + $0x28] sm:$0xff] }
  0xa9   : > { %1708 = vmatpush3.bf16.msra.mxu0 %v1942_v3  ;;  %1809 = vmatpush3.bf16.msra.mxu1 %v1942_v3  ;;  %v454_v48 = vld [vmem:[#allocation2 + $0x78] sm:$0xff]  ;;  %v452_v54 = vld [vmem:[#allocation2 + $0x68] sm:$0xff] }
  0xaa   : > { %1709 = vmatprep.subr.bf16.mxu0 %v1943_v4  ;;  %1802 = vmatprep.subr.bf16.mxu1 %v1943_v4 }
  0xad   : > { %1710 = vmatpush3.bf16.msra.mxu0 %v1943_v4  ;;  %1810 = vmatpush3.bf16.msra.mxu1 %v1943_v4  ;;  %v2189_v4 = vmov (!%p1614_p6), 16  }
  0xae   : > { %1711 = vmatprep.subr.bf16.mxu0 %v1944_v7  ;;  %1803 = vmatprep.subr.bf16.mxu1 %v1944_v7 }
  0xaf   : > { %1957 = vset.pattern.permute.xlu1 (!%p1614_p6), %v2189_v4  ;;  %1956 = vset.pattern.permute.xlu0 (!%p1614_p6), %v2189_v4 }
  0xb1   : > { %1712 = vmatpush3.bf16.msra.mxu0 %v1944_v7  ;;  %1811 = vmatpush3.bf16.msra.mxu1 %v1944_v7 }
  0xb2   : > { %1713 = vmatprep.subr.bf16.mxu0 %v1945_v8  ;;  %1804 = vmatprep.subr.bf16.mxu1 %v1945_v8 }
  0xb5   : > { %1714 = vmatpush3.bf16.msra.mxu0 %v1945_v8  ;;  %1812 = vmatpush3.bf16.msra.mxu1 %v1945_v8 }
  0xb6   : > { %1715 = vmatprep.subr.bf16.mxu0 %v1946_v9  ;;  %1805 = vmatprep.subr.bf16.mxu1 %v1946_v9 }
  0xb9   : > { %1716 = vmatpush3.bf16.msra.mxu0 %v1946_v9  ;;  %1813 = vmatpush3.bf16.msra.mxu1 %v1946_v9 }
  0xba   : > { %1717 = vmatprep.subr.bf16.mxu0 %v1947_v10  ;;  %1806 = vmatprep.subr.bf16.mxu1 %v1947_v10 }
  0xbd   : > { %1718 = vmatpush3.bf16.msra.mxu0 %v1947_v10  ;;  %1814 = vmatpush3.bf16.msra.mxu1 %v1947_v10 }
  0xc0   : > { %1720 = vmatmul.mubr.bf16.vlgmr.msra.gmra.mrb[0].mxu0 %v1950_v11  ;;  %1728 = vmatmul.mubr.bf16.vlgmr.msra.gmra.mrb[0].mxu1 %v1951_v12 }
  0xc1   : > { %1723 = vmatprep.mubr.bf16.mxu0 %v1952_v13  ;;  %1731 = vmatprep.mubr.bf16.mxu1 %v1953_v14 }
  0xc8   : > { %1724 = vmatmul.mubr.bf16.gmra.mrb[4].mxu0 %v1954_v15  ;;  %1732 = vmatmul.mubr.bf16.gmra.mrb[4].mxu1 %v1955_v16 }
 0x193   : > { %v1721_v21 = vpop.f32.mrb[0].mxu0  ;;  %v1729_v22 = vpop.f32.mrb[0].mxu1 }
 0x194   : > { %v682_v25 = vadd.f32 %v1721_v21, %v441_v17  ;;  %v690_v26 = vadd.f32 %v1729_v22, %v449_v18  ;;  %v617_v27 = vpop.f32.mrb[1].mxu0  ;;  %v649_v28 = vpop.f32.mrb[1].mxu1  ;;  %v880_v21 = vld [vmem:[#allocation7 + $0x8] sm:$0xff] (!%p1614_p6) }
 0x195   : > { %v680_v31 = vadd.f32 %v617_v27, %v439_v19  ;;  %v688_v32 = vadd.f32 %v649_v28, %v447_v20  ;;  %v1722_v33 = vpop.f32.mrb[2].mxu0  ;;  %v1730_v34 = vpop.f32.mrb[2].mxu1  ;;  %v879_v20 = vld [vmem:[#allocation7] sm:$0xff] (!%p1614_p6) }
 0x196   : > { %699 = vst.msk [vmem:[#allocation2 + $0x10] sm:$0xff] %vm696_vm1, %v682_v25  ;;  %707 = vst.msk [vmem:[#allocation2 + $0x50] sm:$0xff] %vm696_vm1, %v690_v26  ;;  %v683_v35 = vadd.f32 %v1722_v33, %v442_v23  ;;  %v691_v36 = vadd.f32 %v1730_v34, %v450_v24  ;;  %v620_v37 = vpop.f32.mrb[3].mxu0  ;;  %v652_v38 = vpop.f32.mrb[3].mxu1  ;;  %v1791_v22 = vpack.c.bf16 (!%p1614_p6), %v880_v21, %v879_v20  ;;  %v861_v23 = vld [vmem:[#allocation5] sm:$0xff] (!%p1614_p6)  ;;  %v862_v24 = vld [vmem:[#allocation5 + $0x8] sm:$0xff] (!%p1614_p6) }
 0x197   : > { %697 = vst.msk [vmem:[#allocation2] sm:$0xff] %vm696_vm1, %v680_v31  ;;  %705 = vst.msk [vmem:[#allocation2 + $0x40] sm:$0xff] %vm696_vm1, %v688_v32  ;;  %v681_v39 = vadd.f32 %v620_v37, %v440_v29  ;;  %v689_v40 = vadd.f32 %v652_v38, %v448_v30  ;;  %v1795_v27 = vpack.c.bf16 (!%p1614_p6), %v862_v24, %v861_v23  ;;  %v863_v30 = vld [vmem:[%s2469_s11] sm:$0xff] (!%p1614_p6)  ;;  %v864_v33 = vld [vmem:[%s2469_s11 + $0x8] sm:$0xff] (!%p1614_p6) }
 0x198   : > { %700 = vst.msk [vmem:[#allocation2 + $0x18] sm:$0xff] %vm696_vm1, %v683_v35  ;;  %708 = vst.msk [vmem:[#allocation2 + $0x58] sm:$0xff] %vm696_vm1, %v691_v36  ;;  %1792 = vmatprep.subr.bf16.mxu1 (!%p1614_p6), %v1791_v22  ;;  %1739 = vmatprep.mubr.msk.f32.mxu1 (!%p1614_p6), %vm881_vm2, %v863_v30  ;;  %v865_v36 = vld [vmem:[%s2469_s11 + $0x10] sm:$0xff] (!%p1614_p6) }
 0x199   : > { %698 = vst.msk [vmem:[#allocation2 + $0x8] sm:$0xff] %vm696_vm1, %v681_v39  ;;  %706 = vst.msk [vmem:[#allocation2 + $0x48] sm:$0xff] %vm696_vm1, %v689_v40  ;;  %1794 = vmatpush3.bf16.msra.mxu1 (!%p1614_p6), %v1791_v22  ;;  %1796 = vmatprep.subr.bf16.mxu0 (!%p1614_p6), %v1795_v27  ;;  %v866_v39 = vld [vmem:[%s2469_s11 + $0x18] sm:$0xff] (!%p1614_p6) }
 0x19a   : > { %1798 = vmatpush3.bf16.msra.mxu0 (!%p1614_p6), %v1795_v27 }
 0x19b   : > { %v1725_v45 = vpop.f32.mrb[4].mxu0  ;;  %v1733_v46 = vpop.f32.mrb[4].mxu1  ;;  %716 = sbr.rel (%p1614_p6) target bundleno = 810 (0x32a), region = 68 }
 0x19c   : > { %v686_v49 = vadd.f32 %v1725_v45, %v445_v41  ;;  %v694_v50 = vadd.f32 %v1733_v46, %v453_v42  ;;  %v633_v51 = vpop.f32.mrb[5].mxu0  ;;  %v665_v52 = vpop.f32.mrb[5].mxu1  ;;  %1740 = vmatmul.mubr.msk.f32.vlgmr.msra.gmra.mrb[0].mxu1 (!%p1614_p6), %vm881_vm2, %v864_v33  ;;  %v867_v42 = vld [vmem:[%s2469_s11 + $0x20] sm:$0xff] (!%p1614_p6)  ;;  %v868_v45 = vld [vmem:[%s2469_s11 + $0x28] sm:$0xff] (!%p1614_p6)  ;;  %v869_v46 = vld [vmem:[%s2469_s11 + $0x30] sm:$0xff] (!%p1614_p6) }
 0x19d   : > { %v684_v55 = vadd.f32 %v633_v51, %v443_v43  ;;  %v692_v56 = vadd.f32 %v665_v52, %v451_v44  ;;  %v1726_v57 = vpop.f32.mrb[6].mxu0  ;;  %v1734_v58 = vpop.f32.mrb[6].mxu1  ;;  %v2531_v1 = vld [vmem:[#allocation2 + $0x10] sm:$0xff] (!%p1614_p6)  ;;  %1742 = vmatprep.mubr.msk.f32.mxu1 (!%p1614_p6), %vm881_vm2, %v865_v36  ;;  %v874_v51 = vld [vmem:[%s2469_s11 + $0x58] sm:$0xff] (!%p1614_p6)  ;;  %v875_v52 = vld [vmem:[%s2469_s11 + $0x60] sm:$0xff] (!%p1614_p6) }
 0x19e   : > { %703 = vst.msk [vmem:[#allocation2 + $0x30] sm:$0xff] %vm696_vm1, %v686_v49  ;;  %711 = vst.msk [vmem:[#allocation2 + $0x70] sm:$0xff] %vm696_vm1, %v694_v50  ;;  %v687_v59 = vadd.f32 %v1726_v57, %v446_v47  ;;  %v695_v60 = vadd.f32 %v1734_v58, %v454_v48  ;;  %v636_v61 = vpop.f32.mrb[7].mxu0  ;;  %v668_v62 = vpop.f32.mrb[7].mxu1  ;;  %v2533_v2 = vld [vmem:[#allocation2] sm:$0xff] (!%p1614_p6)  ;;  %v735_v5 = vmax.f32 (!%p1614_p6), %v2531_v1, 1.0 }
 0x19f   : > { %701 = vst.msk [vmem:[#allocation2 + $0x20] sm:$0xff] %vm696_vm1, %v684_v55  ;;  %709 = vst.msk [vmem:[#allocation2 + $0x60] sm:$0xff] %vm696_vm1, %v692_v56  ;;  %v685_v63 = vadd.f32 %v636_v61, %v444_v53  ;;  %v693_v0 = vadd.f32 %v668_v62, %v452_v54  ;;  %v2535_v3 = vld [vmem:[#allocation2 + $0x18] sm:$0xff] (!%p1614_p6)  ;;  %v733_v6 = vmax.f32 (!%p1614_p6), %v2533_v2, 1.0  ;;  %v2557_v19 = vld [vmem:[#allocation2 + $0x40] sm:$0xff] (!%p1614_p6) }
 0x1a0   : > { %704 = vst.msk [vmem:[#allocation2 + $0x38] sm:$0xff] %vm696_vm1, %v687_v59  ;;  %712 = vst.msk [vmem:[#allocation2 + $0x78] sm:$0xff] %vm696_vm1, %v695_v60  ;;  %v2539_v7 = vld [vmem:[#allocation2 + $0x8] sm:$0xff] (!%p1614_p6)  ;;  %761 = vperm.xlu1 (!%p1614_p6), %1957, %v735_v5   ;;  %v736_v8 = vmax.f32 (!%p1614_p6), %v2535_v3, 1.0  ;;  %v741_v26 = vmax.f32 (!%p1614_p6), %v2557_v19, 1.0  ;;  %v2561_v28 = vld [vmem:[#allocation2 + $0x58] sm:$0xff] (!%p1614_p6)  ;;  %1743 = vmatmul.mubr.msk.f32.gmra.mrb[2].mxu1 (!%p1614_p6), %vm881_vm2, %v866_v39 }
 0x1a1   : > { %702 = vst.msk [vmem:[#allocation2 + $0x28] sm:$0xff] %vm696_vm1, %v685_v63  ;;  %710 = vst.msk [vmem:[#allocation2 + $0x68] sm:$0xff] %vm696_vm1, %v693_v0  ;;  %751 = vperm.xlu0 (!%p1614_p6), %1956, %v733_v6   ;;  %v734_v9 = vmax.f32 (!%p1614_p6), %v2539_v7, 1.0  ;;  %v2555_v18 = vld [vmem:[#allocation2 + $0x48] sm:$0xff] (!%p1614_p6)  ;;  %v2563_v29 = vld [vmem:[#allocation2 + $0x50] sm:$0xff] (!%p1614_p6)  ;;  %v744_v31 = vmax.f32 (!%p1614_p6), %v2561_v28, 1.0  ;;  %1745 = vmatprep.mubr.msk.f32.mxu1 (!%p1614_p6), %vm881_vm2, %v867_v42 }
 0x1a2   : > { %v742_v25 = vmax.f32 %v2555_v18, 1.0  ;;  %v743_v32 = vmax.f32 %v2563_v29, 1.0  ;;  %v870_v47 = vld [vmem:[%s2469_s11 + $0x38] sm:$0xff]  ;;  %v871_v48 = vld [vmem:[%s2469_s11 + $0x40] sm:$0xff]  ;;  %v872_v49 = vld [vmem:[%s2469_s11 + $0x48] sm:$0xff] }
 0x1a3   : > { %v873_v50 = vld [vmem:[%s2469_s11 + $0x50] sm:$0xff]  ;;  %v876_v53 = vld [vmem:[%s2469_s11 + $0x68] sm:$0xff]  ;;  %v878_v55 = vld [vmem:[%s2469_s11 + $0x78] sm:$0xff] }
 0x1a4   : > { %766 = vperm.xlu1 %1957, %v736_v8   ;;  %1746 = vmatmul.mubr.msk.f32.gmra.mrb[4].mxu1 %vm881_vm2, %v868_v45  ;;  %v877_v54 = vld [vmem:[%s2469_s11 + $0x70] sm:$0xff] }
 0x1a5   : > { %756 = vperm.xlu0 %1956, %v734_v9   ;;  %v2551_v15 = vld [vmem:[#allocation2 + $0x30] sm:$0xff]  ;;  %1748 = vmatprep.mubr.msk.f32.mxu1 %vm881_vm2, %v869_v46 }
 0x1a6   : > { %v2545_v11 = vld [vmem:[#allocation2 + $0x20] sm:$0xff]  ;;  %v739_v17 = vmax.f32 %v2551_v15, 1.0  ;;  %v2581_v41 = vld [vmem:[#allocation2 + $0x70] sm:$0xff] }
 0x1a7   : > { %v737_v13 = vmax.f32 %v2545_v11, 1.0  ;;  %v2549_v14 = vld [vmem:[#allocation2 + $0x38] sm:$0xff]  ;;  %v2572_v35 = vld [vmem:[#allocation2 + $0x60] sm:$0xff]  ;;  %v747_v44 = vmax.f32 %v2581_v41, 1.0 }
 0x1a8   : > { %v2543_v10 = vld [vmem:[#allocation2 + $0x28] sm:$0xff]  ;;  %v740_v16 = vmax.f32 %v2549_v14, 1.0  ;;  %v745_v38 = vmax.f32 %v2572_v35, 1.0  ;;  %v2579_v40 = vld [vmem:[#allocation2 + $0x78] sm:$0xff]  ;;  %1749 = vmatmul.mubr.msk.f32.gmra.mrb[6].mxu1 %vm881_vm2, %v870_v47 }
 0x1a9   : > { %v738_v12 = vmax.f32 %v2543_v10, 1.0  ;;  %771 = vperm.xlu0 %1956, %v737_v13   ;;  %v2570_v34 = vld [vmem:[#allocation2 + $0x68] sm:$0xff]  ;;  %v748_v43 = vmax.f32 %v2579_v40, 1.0  ;;  %1751 = vmatprep.mubr.msk.f32.mxu1 %vm881_vm2, %v871_v48 }
 0x1aa   : > { %v746_v37 = vmax.f32 %v2570_v34, 1.0 }
 0x1ab   : > { %776 = vperm.xlu1 %1957, %v738_v12  }
 0x1ac   : > { %1752 = vmatmul.mubr.msk.f32.gmra.mrb[8].mxu1 %vm881_vm2, %v872_v49 }
 0x1ad   : > { %781 = vperm.xlu0 %1956, %v739_v17   ;;  %1754 = vmatprep.mubr.msk.f32.mxu1 %vm881_vm2, %v873_v50 }
 0x1af   : > { %786 = vperm.xlu1 %1957, %v740_v16  }
 0x1b0   : > { %1755 = vmatmul.mubr.msk.f32.gmra.mrb[10].mxu1 %vm881_vm2, %v874_v51 }
 0x1b1   : > { %791 = vperm.xlu0 %1956, %v741_v26   ;;  %1757 = vmatprep.mubr.msk.f32.mxu1 %vm881_vm2, %v875_v52 }
 0x1b3   : > { %796 = vperm.xlu1 %1957, %v742_v25  }
 0x1b4   : > { %1758 = vmatmul.mubr.msk.f32.gmra.mrb[12].mxu1 %vm881_vm2, %v876_v53 }
 0x1b5   : > { %801 = vperm.xlu0 %1956, %v743_v32   ;;  %1760 = vmatprep.mubr.msk.f32.mxu1 %vm881_vm2, %v877_v54 }
 0x1b7   : > { %806 = vperm.xlu1 %1957, %v744_v31  }
 0x1b8   : > { %1761 = vmatmul.mubr.msk.f32.gmra.mrb[14].mxu1 %vm881_vm2, %v878_v55 }
 0x1b9   : > { %811 = vperm.xlu0 %1956, %v745_v38  }
 0x1bb   : > { %816 = vperm.xlu1 %1957, %v746_v37  }
 0x1bd   : > { %821 = vperm.xlu0 %1956, %v747_v44  }
 0x1bf   : > { %826 = vperm.xlu1 %1957, %v748_v43  }
 0x1c1   : > { %1340 = vrot.lane.b32.xlu0 %v2533_v2, %s2190_s27 }
 0x1c3   : > { %1342 = vrot.lane.b32.xlu1 %v2539_v7, %s2190_s27 }
 0x1c5   : > { %1344 = vrot.lane.b32.xlu0 %v2531_v1, %s2190_s27 }
 0x1c7   : > { %1346 = vrot.lane.b32.xlu1 %v2535_v3, %s2190_s27 }
 0x1c9   : > { %1348 = vrot.lane.b32.xlu0 %v2545_v11, %s2190_s27 }
 0x1cb   : > { %1350 = vrot.lane.b32.xlu1 %v2543_v10, %s2190_s27 }
 0x1cd   : > { %1352 = vrot.lane.b32.xlu0 %v2551_v15, %s2190_s27 }
 0x1cf   : > { %1354 = vrot.lane.b32.xlu1 %v2549_v14, %s2190_s27 }
 0x1d1   : > { %1356 = vrot.lane.b32.xlu0 %v2557_v19, %s2190_s27 }
 0x1d3   : > { %1358 = vrot.lane.b32.xlu1 %v2555_v18, %s2190_s27 }
 0x1d5   : > { %1360 = vrot.lane.b32.xlu0 %v2563_v29, %s2190_s27 }
 0x1d7   : > { %1362 = vrot.lane.b32.xlu1 %v2561_v28, %s2190_s27 }
 0x1d9   : > { %1364 = vrot.lane.b32.xlu0 %v2572_v35, %s2190_s27 }
 0x1db   : > { %1366 = vrot.lane.b32.xlu1 %v2570_v34, %s2190_s27 }
 0x1dd   : > { %1368 = vrot.lane.b32.xlu0 %v2581_v41, %s2190_s27 }
 0x1df   : > { %1370 = vrot.lane.b32.xlu1 %v2579_v40, %s2190_s27 }
 0x21f   : > { %v762_v56 = vpop.permute.xlu1 %761 }
 0x220   : > { %v752_v57 = vpop.permute.xlu0 %751 }
 0x221   : > { %1958 = vrcp.f32 %v752_v57 }
 0x222   : > { %1960 = vrcp.f32 %v762_v56 }
 0x223   : > { %v767_v58 = vpop.permute.xlu1 %766 }
 0x224   : > { %v757_v59 = vpop.permute.xlu0 %756 }
 0x225   : > { %1962 = vrcp.f32 %v757_v59 }
 0x226   : > { %1964 = vrcp.f32 %v767_v58 }
 0x228   : > { %v772_v61 = vpop.permute.xlu0 %771 }
 0x229   : > { %1966 = vrcp.f32 %v772_v61 }
 0x22a   : > { %v777_v60 = vpop.permute.xlu1 %776 }
 0x22b   : > { %v1959_v62 = vpop.eup %1958  ;;  %1968 = vrcp.f32 %v777_v60 }
 0x22c   : > { %v782_v0 = vpop.permute.xlu0 %781  ;;  %v1961_v4 = vpop.eup %1960  ;;  %v830_v5 = vmul.f32 %v1959_v62, %v2533_v2 }
 0x22d   : > { %1970 = vrcp.f32 %v782_v0  ;;  %v834_v12 = vmul.f32 %v1961_v4, %v2531_v1 }
 0x22e   : > { %v787_v63 = vpop.permute.xlu1 %786  ;;  %1767 = vmatprep.mubr.msk.f32.mxu0 %vm881_vm2, %v830_v5 }
 0x22f   : > { %v1963_v6 = vpop.eup %1962  ;;  %1972 = vrcp.f32 %v787_v63 }
 0x230   : > { %v792_v9 = vpop.permute.xlu0 %791  ;;  %v832_v13 = vmul.f32 %v1963_v6, %v2539_v7  ;;  %v1965_v16 = vpop.eup %1964 }
 0x231   : > { %1974 = vrcp.f32 %v792_v9  ;;  %v836_v21 = vmul.f32 %v1965_v16, %v2535_v3 }
 0x232   : > { %v797_v8 = vpop.permute.xlu1 %796  ;;  %1768 = vmatmul.mubr.msk.f32.vlgmr.msra.gmra.mrb[0].mxu0 %vm881_vm2, %v832_v13 }
 0x233   : > { %v1967_v17 = vpop.eup %1966  ;;  %1976 = vrcp.f32 %v797_v8  ;;  %1770 = vmatprep.mubr.msk.f32.mxu0 %vm881_vm2, %v834_v12 }
 0x234   : > { %v802_v20 = vpop.permute.xlu0 %801  ;;  %v838_v22 = vmul.f32 %v1967_v17, %v2545_v11  ;;  %v2711_v17 = vld [vmem:[#allocation8] ss:$0 sm:$0xff] }
 0x235   : > { %v1969_v23 = vpop.eup %1968  ;;  %1978 = vrcp.f32 %v802_v20 }
 0x236   : > { %v807_v2 = vpop.permute.xlu1 %806  ;;  %1771 = vmatmul.mubr.msk.f32.gmra.mrb[2].mxu0 %vm881_vm2, %v836_v21  ;;  %v840_v25 = vmul.f32 %v1969_v23, %v2543_v10 }
 0x237   : > { %v1971_v1 = vpop.eup %1970  ;;  %1980 = vrcp.f32 %v807_v2  ;;  %1773 = vmatprep.mubr.msk.f32.mxu0 %vm881_vm2, %v838_v22 }
 0x238   : > { %v812_v24 = vpop.permute.xlu0 %811  ;;  %v842_v26 = vmul.f32 %v1971_v1, %v2551_v15 }
 0x239   : > { %v1973_v27 = vpop.eup %1972  ;;  %1982 = vrcp.f32 %v812_v24 }
 0x23a   : > { %v817_v7 = vpop.permute.xlu1 %816  ;;  %1774 = vmatmul.mubr.msk.f32.gmra.mrb[4].mxu0 %vm881_vm2, %v840_v25  ;;  %v844_v31 = vmul.f32 %v1973_v27, %v2549_v14 }
 0x23b   : > { %v1975_v3 = vpop.eup %1974  ;;  %1984 = vrcp.f32 %v817_v7  ;;  %1776 = vmatprep.mubr.msk.f32.mxu0 %vm881_vm2, %v842_v26 }
 0x23c   : > { %v822_v11 = vpop.permute.xlu0 %821  ;;  %v846_v32 = vmul.f32 %v1975_v3, %v2557_v19 }
 0x23d   : > { %v1977_v33 = vpop.eup %1976  ;;  %1986 = vrcp.f32 %v822_v11 }
 0x23e   : > { %v827_v30 = vpop.permute.xlu1 %826  ;;  %1777 = vmatmul.mubr.msk.f32.gmra.mrb[6].mxu0 %vm881_vm2, %v844_v31  ;;  %v848_v15 = vmul.f32 %v1977_v33, %v2555_v18 }
 0x23f   : > { %v1979_v10 = vpop.eup %1978  ;;  %1988 = vrcp.f32 %v827_v30  ;;  %1779 = vmatprep.mubr.msk.f32.mxu0 %vm881_vm2, %v846_v32 }
 0x240   : > { %v850_v36 = vmul.f32 %v1979_v10, %v2563_v29 }
 0x241   : > { %v1981_v37 = vpop.eup %1980 }
 0x242   : > { %1780 = vmatmul.mubr.msk.f32.gmra.mrb[8].mxu0 %vm881_vm2, %v848_v15  ;;  %v852_v14 = vmul.f32 %v1981_v37, %v2561_v28 }
 0x243   : > { %v1983_v38 = vpop.eup %1982  ;;  %1782 = vmatprep.mubr.msk.f32.mxu0 %vm881_vm2, %v850_v36 }
 0x244   : > { %v854_v19 = vmul.f32 %v1983_v38, %v2572_v35 }
 0x245   : > { %v1985_v39 = vpop.eup %1984 }
 0x246   : > { %1783 = vmatmul.mubr.msk.f32.gmra.mrb[10].mxu0 %vm881_vm2, %v852_v14  ;;  %v856_v18 = vmul.f32 %v1985_v39, %v2570_v34  ;;  %v1343_v34 = vpop.permute.xlu1 %1342 }
 0x247   : > { %v1987_v42 = vpop.eup %1986  ;;  %1785 = vmatprep.mubr.msk.f32.mxu0 %vm881_vm2, %v854_v19  ;;  %1390 = vst.msk [vmem:[%s2479_s13 + $0x8] sm:$0xff] %vm1388_vm3, %v1343_v34 }
 0x248   : > { %v858_v29 = vmul.f32 %v1987_v42, %v2581_v41  ;;  %v1341_v41 = vpop.permute.xlu0 %1340 }
 0x249   : > { %v1989_v43 = vpop.eup %1988  ;;  %1389 = vst.msk [vmem:[%s2479_s13] sm:$0xff] %vm1388_vm3, %v1341_v41 }
 0x24a   : > { %1786 = vmatmul.mubr.msk.f32.gmra.mrb[12].mxu0 %vm881_vm2, %v856_v18  ;;  %v860_v28 = vmul.f32 %v1989_v43, %v2579_v40  ;;  %v1347_v40 = vpop.permute.xlu1 %1346 }
 0x24b   : > { %1788 = vmatprep.mubr.msk.f32.mxu0 %vm881_vm2, %v858_v29  ;;  %1392 = vst.msk [vmem:[%s2479_s13 + $0x18] sm:$0xff] %vm1388_vm3, %v1347_v40 }
 0x24c   : > { %v1345_v49 = vpop.permute.xlu0 %1344 }
 0x24d   : > { %1391 = vst.msk [vmem:[%s2479_s13 + $0x10] sm:$0xff] %vm1388_vm3, %v1345_v49 }
 0x24e   : > { %1789 = vmatmul.mubr.msk.f32.gmra.mrb[14].mxu0 %vm881_vm2, %v860_v28  ;;  %v1351_v52 = vpop.permute.xlu1 %1350 }
 0x24f   : > { %1394 = vst.msk [vmem:[%s2479_s13 + $0x28] sm:$0xff] %vm1388_vm3, %v1351_v52 }
 0x250   : > { %v1349_v53 = vpop.permute.xlu0 %1348 }
 0x251   : > { %1393 = vst.msk [vmem:[%s2479_s13 + $0x20] sm:$0xff] %vm1388_vm3, %v1349_v53 }
 0x252   : > { %v1355_v56 = vpop.permute.xlu1 %1354 }
 0x253   : > { %1396 = vst.msk [vmem:[%s2479_s13 + $0x38] sm:$0xff] %vm1388_vm3, %v1355_v56 }
 0x254   : > { %v1353_v57 = vpop.permute.xlu0 %1352 }
 0x255   : > { %1395 = vst.msk [vmem:[%s2479_s13 + $0x30] sm:$0xff] %vm1388_vm3, %v1353_v57 }
 0x256   : > { %v1359_v60 = vpop.permute.xlu1 %1358 }
 0x257   : > { %1398 = vst.msk [vmem:[%s2479_s13 + $0x48] sm:$0xff] %vm1388_vm3, %v1359_v60 }
 0x258   : > { %v1357_v61 = vpop.permute.xlu0 %1356 }
 0x259   : > { %1397 = vst.msk [vmem:[%s2479_s13 + $0x40] sm:$0xff] %vm1388_vm3, %v1357_v61 }
 0x25a   : > { %v1363_v0 = vpop.permute.xlu1 %1362 }
 0x25b   : > { %1400 = vst.msk [vmem:[%s2479_s13 + $0x58] sm:$0xff] %vm1388_vm3, %v1363_v0 }
 0x25c   : > { %v1361_v4 = vpop.permute.xlu0 %1360 }
 0x25d   : > { %1399 = vst.msk [vmem:[%s2479_s13 + $0x50] sm:$0xff] %vm1388_vm3, %v1361_v4 }
 0x25e   : > { %v1367_v8 = vpop.permute.xlu1 %1366 }
 0x25f   : > { %1402 = vst.msk [vmem:[%s2479_s13 + $0x68] sm:$0xff] %vm1388_vm3, %v1367_v8 }
 0x260   : > { %v1365_v9 = vpop.permute.xlu0 %1364 }
 0x261   : > { %1401 = vst.msk [vmem:[%s2479_s13 + $0x60] sm:$0xff] %vm1388_vm3, %v1365_v9 }
 0x262   : > { %v1371_v12 = vpop.permute.xlu1 %1370 }
 0x263   : > { %1404 = vst.msk [vmem:[%s2479_s13 + $0x78] sm:$0xff] %vm1388_vm3, %v1371_v12 }
 0x264   : > { %v1369_v13 = vpop.permute.xlu0 %1368 }
 0x265   : > { %1403 = vst.msk [vmem:[%s2479_s13 + $0x70] sm:$0xff] %vm1388_vm3, %v1369_v13 }
 0x26f   : > { %v1741_v35 = vpop.f32.mrb[0].mxu1 }
 0x270   : > { %v996_v44 = vpop.f32.mrb[1].mxu1 }
 0x273   : > { %v1744_v45 = vpop.f32.mrb[2].mxu1 }
 0x274   : > { %v1006_v46 = vpop.f32.mrb[3].mxu1 }
 0x277   : > { %v1747_v47 = vpop.f32.mrb[4].mxu1 }
 0x278   : > { %v1016_v48 = vpop.f32.mrb[5].mxu1 }
 0x27b   : > { %v2663_v50 = vpop.f32.mrb[6].mxu1 }
 0x27c   : > { %v2669_v51 = vpop.f32.mrb[7].mxu1 }
 0x27f   : > { %v2671_v54 = vpop.f32.mrb[8].mxu1 }
 0x280   : > { %v2677_v55 = vpop.f32.mrb[9].mxu1 }
 0x283   : > { %v2679_v58 = vpop.f32.mrb[10].mxu1 }
 0x284   : > { %v2685_v59 = vpop.f32.mrb[11].mxu1 }
 0x287   : > { %v2687_v62 = vpop.f32.mrb[12].mxu1 }
 0x288   : > { %v2693_v63 = vpop.f32.mrb[13].mxu1 }
 0x28b   : > { %v2695_v5 = vpop.f32.mrb[14].mxu1 }
 0x28c   : > { %v2701_v6 = vpop.f32.mrb[15].mxu1 }
 0x305   : > { %v1769_v16 = vpop.f32.mrb[0].mxu0 }
 0x306   : > { %v1195_v2 = vadd.f32 %v1769_v16, %v1741_v35  ;;  %v1189_v20 = vpop.f32.mrb[1].mxu0 }
 0x307   : > { %v1190_v21 = vadd.f32 %v1189_v20, %v996_v44 }
 0x308   : > { %v1276_v22 = vadd.f32 %v2711_v17, %v1195_v2 }
 0x309   : > { %v1275_v23 = vadd.f32 %v2711_v17, %v1190_v21  ;;  %v1772_v1 = vpop.f32.mrb[2].mxu0 }
 0x30a   : > { %v1292_v7 = vmax.f32 %v1276_v22, 0.0  ;;  %v1205_v24 = vadd.f32 %v1772_v1, %v1744_v45  ;;  %v1199_v25 = vpop.f32.mrb[3].mxu0 }
 0x30b   : > { %v1291_v26 = vmax.f32 %v1275_v23, 0.0  ;;  %v1200_v27 = vadd.f32 %v1199_v25, %v1006_v46 }
 0x30c   : > { %1309 = vst.msk [vmem:[%s2474_s28 + $0x8] sm:$0xff] %vm1307_vm4, %v1292_v7  ;;  %v1278_v3 = vadd.f32 %v2711_v17, %v1205_v24 }
 0x30d   : > { %1308 = vst.msk [vmem:[%s2474_s28] sm:$0xff] %vm1307_vm4, %v1291_v26  ;;  %v1277_v11 = vadd.f32 %v2711_v17, %v1200_v27  ;;  %v1775_v30 = vpop.f32.mrb[4].mxu0 }
 0x30e   : > { %v1294_v31 = vmax.f32 %v1278_v3, 0.0  ;;  %v1215_v32 = vadd.f32 %v1775_v30, %v1747_v47  ;;  %v1209_v33 = vpop.f32.mrb[5].mxu0 }
 0x30f   : > { %v1293_v10 = vmax.f32 %v1277_v11, 0.0  ;;  %v1210_v15 = vadd.f32 %v1209_v33, %v1016_v48 }
 0x310   : > { %1311 = vst.msk [vmem:[%s2474_s28 + $0x18] sm:$0xff] %vm1307_vm4, %v1294_v31  ;;  %v1280_v36 = vadd.f32 %v2711_v17, %v1215_v32 }
 0x311   : > { %1310 = vst.msk [vmem:[%s2474_s28 + $0x10] sm:$0xff] %vm1307_vm4, %v1293_v10  ;;  %v1279_v37 = vadd.f32 %v2711_v17, %v1210_v15  ;;  %v1778_v38 = vpop.f32.mrb[6].mxu0 }
 0x312   : > { %v1296_v14 = vmax.f32 %v1280_v36, 0.0  ;;  %v1225_v19 = vadd.f32 %v1778_v38, %v2663_v50  ;;  %v1219_v39 = vpop.f32.mrb[7].mxu0 }
 0x313   : > { %v1295_v42 = vmax.f32 %v1279_v37, 0.0  ;;  %v1220_v18 = vadd.f32 %v1219_v39, %v2669_v51 }
 0x314   : > { %1313 = vst.msk [vmem:[%s2474_s28 + $0x28] sm:$0xff] %vm1307_vm4, %v1296_v14  ;;  %v1282_v29 = vadd.f32 %v2711_v17, %v1225_v19 }
 0x315   : > { %1312 = vst.msk [vmem:[%s2474_s28 + $0x20] sm:$0xff] %vm1307_vm4, %v1295_v42  ;;  %v1281_v43 = vadd.f32 %v2711_v17, %v1220_v18  ;;  %v1781_v28 = vpop.f32.mrb[8].mxu0 }
 0x316   : > { %v1298_v35 = vmax.f32 %v1282_v29, 0.0  ;;  %v1235_v44 = vadd.f32 %v1781_v28, %v2671_v54  ;;  %v1229_v45 = vpop.f32.mrb[9].mxu0 }
 0x317   : > { %v1297_v46 = vmax.f32 %v1281_v43, 0.0  ;;  %v1230_v34 = vadd.f32 %v1229_v45, %v2677_v55 }
 0x318   : > { %1315 = vst.msk [vmem:[%s2474_s28 + $0x38] sm:$0xff] %vm1307_vm4, %v1298_v35  ;;  %v1284_v41 = vadd.f32 %v2711_v17, %v1235_v44 }
 0x319   : > { %1314 = vst.msk [vmem:[%s2474_s28 + $0x30] sm:$0xff] %vm1307_vm4, %v1297_v46  ;;  %v1283_v47 = vadd.f32 %v2711_v17, %v1230_v34  ;;  %v1784_v48 = vpop.f32.mrb[10].mxu0 }
 0x31a   : > { %v1300_v40 = vmax.f32 %v1284_v41, 0.0  ;;  %v1245_v49 = vadd.f32 %v1784_v48, %v2679_v58  ;;  %v1239_v50 = vpop.f32.mrb[11].mxu0 }
 0x31b   : > { %v1299_v51 = vmax.f32 %v1283_v47, 0.0  ;;  %v1240_v52 = vadd.f32 %v1239_v50, %v2685_v59 }
 0x31c   : > { %1317 = vst.msk [vmem:[%s2474_s28 + $0x48] sm:$0xff] %vm1307_vm4, %v1300_v40  ;;  %v1286_v53 = vadd.f32 %v2711_v17, %v1245_v49 }
 0x31d   : > { %1316 = vst.msk [vmem:[%s2474_s28 + $0x40] sm:$0xff] %vm1307_vm4, %v1299_v51  ;;  %v1285_v54 = vadd.f32 %v2711_v17, %v1240_v52  ;;  %v1787_v55 = vpop.f32.mrb[12].mxu0 }
 0x31e   : > { %v1302_v56 = vmax.f32 %v1286_v53, 0.0  ;;  %v1255_v57 = vadd.f32 %v1787_v55, %v2687_v62  ;;  %v1249_v58 = vpop.f32.mrb[13].mxu0 }
 0x31f   : > { %v1301_v60 = vmax.f32 %v1285_v54, 0.0  ;;  %v1250_v61 = vadd.f32 %v1249_v58, %v2693_v63 }
 0x320   : > { %1319 = vst.msk [vmem:[%s2474_s28 + $0x58] sm:$0xff] %vm1307_vm4, %v1302_v56  ;;  %v1288_v59 = vadd.f32 %v2711_v17, %v1255_v57 }
 0x321   : > { %1318 = vst.msk [vmem:[%s2474_s28 + $0x50] sm:$0xff] %vm1307_vm4, %v1301_v60  ;;  %v1287_v0 = vadd.f32 %v2711_v17, %v1250_v61  ;;  %v1790_v4 = vpop.f32.mrb[14].mxu0 }
 0x322   : > { %v1304_v8 = vmax.f32 %v1288_v59, 0.0  ;;  %v1265_v9 = vadd.f32 %v1790_v4, %v2695_v5  ;;  %v1259_v62 = vpop.f32.mrb[15].mxu0 }
 0x323   : > { %v1303_v12 = vmax.f32 %v1287_v0, 0.0  ;;  %v1260_v13 = vadd.f32 %v1259_v62, %v2701_v6 }
 0x324   : > { %1321 = vst.msk [vmem:[%s2474_s28 + $0x68] sm:$0xff] %vm1307_vm4, %v1304_v8  ;;  %v1290_v63 = vadd.f32 %v2711_v17, %v1265_v9 }
 0x325   : > { %1320 = vst.msk [vmem:[%s2474_s28 + $0x60] sm:$0xff] %vm1307_vm4, %v1303_v12  ;;  %v1289_v16 = vadd.f32 %v2711_v17, %v1260_v13 }
 0x326   : > { %v1306_v2 = vmax.f32 %v1290_v63, 0.0 }
 0x327   : > { %v1305_v20 = vmax.f32 %v1289_v16, 0.0 }
 0x328   : > { %1323 = vst.msk [vmem:[%s2474_s28 + $0x78] sm:$0xff] %vm1307_vm4, %v1306_v2 }
 0x329   : > { %1322 = vst.msk [vmem:[%s2474_s28 + $0x70] sm:$0xff] %vm1307_vm4, %v1305_v20 }
 0x32a PF: > { %s2827_s15 = sld [smem:[#allocation13_spill]]  ;;  %s2828_s24 = smov %s2154_s25 }
 0x32b   : > { %s2829_s25 = smov %s2158_s26  ;;  %s2830_s26 = smov %s2440_s19 }
 0x32c   : > { %s2831_s27 = smov %s2170_s29  ;;  %s2832_s28 = smov %s2174_s30 }
 0x32d   : > { %s2833_s29 = smov %s2836_s3  ;;  %s2834_s30 = smov %s2840_s9 }
 0x330   : > { %s23_s8 = sadd.s32 1, %s2827_s15  }
 0x331   : > { %p20_p0 = scmp.ge.s32.totalorder %s23_s8, 6  }
 0x333   :  { %22 = sbr.rel (!%p20_p0) target bundleno = 11 (0xb), region = 122 }
 0x33a   :  { %1444 = vsyncpa [#allocation4], 1 }
 0x33b   :  { %1446 = vsyncpa [#allocation4 + $0x1], 1 }
 0x33c   :  { %1447 = vsyncpa [#allocation6], 1 }
 0x33d   :  { %1448 = vsyncpa [#allocation9], 1 }

// kernel: link_pred_forward.3
= control target key start
LH: loop header
LB: loop body
LE: loop exit
PB: predicated region body
PF: predicated region fallthrough
CT: control target
= control target key end

     0   :  { %s2436_s0 = inlined_call_operand.hbm [shape: bf16[256,256], index: 0, kind: input, shape index: {}]   ;;  %s2437_s1 = inlined_call_operand.vmem [shape: bf16[256,16], index: 1, kind: input, shape index: {}]   ;;  %s2438_s2 = inlined_call_operand.vmem [shape: f32[256,32], index: 2, kind: input, shape index: {}]   ;;  %s2439_s3 = inlined_call_operand.vmem [shape: f32[256,1], index: 3, kind: input, shape index: {}]   ;;  %s2440_s4 = inlined_call_operand.vmem [shape: f32[32,16], index: 4, kind: input, shape index: {}]   ;;  %s2441_s5 = inlined_call_operand.hbm [shape: f32[1,16], index: 5, kind: input, shape index: {}]   ;;  %s2442_s6 = inlined_call_operand.vmem [shape: f32[16,16], index: 6, kind: input, shape index: {}]   ;;  %s2443_s7 = inlined_call_operand.vmem [shape: f32[1,16], index: 7, kind: input, shape index: {}]   ;;  %s2444_s8 = inlined_call_operand.vmem [shape: f32[256,16], index: 8, kind: output, shape index: {}]  }
   0x1   :  { %2453 = sst [smem:[#allocation12_spill]] %s2441_s5 }
   0x2   :  { %2454 = sst [smem:[#allocation13_spill]] %s2443_s7 }
   0x3   :  { %13 = vsyncpa [#allocation4], 0 }
   0x4   :  { %15 = vsyncpa [#allocation4 + $0x1], 0 }
   0x5   :  { %16 = vsyncpa [#allocation6], 0  ;;  %s2049_s27 = smov 0   ;;  %s2051_s28 = smov 0  }
   0x6   :  { %s2053_s29 = smov 0   ;;  %s2055_s30 = smov 0  }
   0x7   :  { %s2057_s9 = smov 0   ;;  %s2059_s10 = smov 0  }
   0x8   :  { %s2061_s11 = smov 0   ;;  %s2063_s12 = smov 0  }
   0x9 LB: > { %2455 = sst [smem:[#allocation9_spill]] %s1995_s12  ;;  %s1481_s13 = sadd.s32 4294967295, %s1995_s12   ;;  %s1995_s12 = sphi %s2063_s12, %s22_s12   ;;  %s1991_s11 = sphi %s2061_s11, %s2479_s11   ;;  %s1987_s10 = sphi %s2059_s10, %s2478_s10   ;;  %s1983_s9 = sphi %s2057_s9, %s2477_s9   ;;  %s1979_s30 = sphi %s2055_s30, %s2476_s30   ;;  %s1975_s29 = sphi %s2053_s29, %s2475_s29   ;;  %s1971_s28 = sphi %s2051_s28, %s2474_s28   ;;  %s1967_s27 = sphi %s2049_s27, %s2473_s27  }
   0xa   : > { %p50_p0 = scmp.ne.s32.totalorder %s1975_s29, %s1971_s28  ;;  %p51_p1 = scmp.eq.s32.totalorder %s1995_s12, 0 }
   0xb   : > { %p56_p2 = scmp.ne.s32.totalorder %s1971_s28, %s1967_s27  ;;  %p2093_p3 = scmp.eq.s32.totalorder %s1481_s13, 0 }
   0xc   : > { %p52_p4 = por %p51_p1, %p50_p0  ;;  %p1483_p5 = scmp.ge.s32.totalorder %s1995_s12, 1 }
   0xd   : > { %s2456_s15 = scalar_select %p2093_p3, 1, 0 }
   0xe   : > { %p2100_p6 = por %p2093_p3, %p56_p2  ;;  %p255_p7 = scmp.lt.s32.totalorder %s1995_s12, 5 }
   0xf   : > { %s1997_s18 = smov [#allocation5]   ;;  %p1745_p10 = scmp.lt.s32.totalorder %s1995_s12, 4 }
  0x10   : > { %s2457_s16 = scalar_select %p2100_p6, 1, 0 }
  0x11   : > { %p2105_p8 = pnand %p1483_p5, %p255_p7  ;;  %s271_s19 = sshll.u32 %s1997_s18, 4  ;;  %s272_s19 = int_to_ptr.vmem [resolvable:$true] %s271_s19 }
  0x12   : > { %p2118_p12 = pnand %p1745_p10, %p52_p4  ;;  %s2461_s5 = sld [smem:[#allocation12_spill]] }
  0x13   : > { %s2458_s17 = scalar_select %p2105_p8, 1, 0 }
  0x14   : > { %p1736_p9 = pneg %p2105_p8 }
  0x15   : > { %s2460_s21 = scalar_select %p2118_p12, 1, 0 }
  0x16   : > { %p2114_p11 = pnand %p1736_p9, %p2093_p3 }
  0x18   : > { %s1867_s24 = scalar_lea.hbm %s2461_s5, 16  ;;  %p1869_p0 = pneg %p2114_p11 }
  0x19   : > { %p1868_p13 = scmp.ne.s32.totalorder %s2461_s5, %s1867_s24  ;;  %p1874_p5 = scmp.lt.u32.totalorder %s1867_s24, %s2461_s5 }
  0x1b   : > { %p1870_p1 = pnand %p1869_p0, %p1868_p13 }
  0x1d   : > { %p1871_p2 = pneg %p1870_p1 }
  0x1f   : > { %p1876_p4 = pnand %p1874_p5, %p1871_p2 }
  0x21   : > { %1879 = shalt.err (!%p1876_p4)
}
  0x22   : > { %s1880_s18 = scalar_lea.vmem %s272_s19, 16  ;;  %s1887_s22 = scalar_lea.vmem %s272_s19, 32 }
  0x23   : > { %p1881_p7 = scmp.ne.s32.totalorder %s272_s19, %s1880_s18  ;;  %p1888_p3 = scmp.lt.s32.totalorder %s272_s19, %s272_s19 }
  0x24   : > { %p1889_p6 = scmp.lt.s32.totalorder %s1887_s22, %s1880_s18 }
  0x25   : > { %p1883_p9 = pnand %p1881_p7, %p1869_p0 }
  0x26   : > { %p1890_p8 = por %p1889_p6, %p1888_p3 }
  0x27   : > { %p1884_p10 = pneg %p1883_p9 }
  0x29   : > { %p1891_p12 = pnand %p1890_p8, %p1884_p10 }
  0x2b   : > { %1894 = shalt.err (!%p1891_p12)
}
  0x2c   : > { %1739 = dma.hbm_to_vmem [thread:$0]  (!%p2114_p11), %s2461_s5, 16, %s272_s19, [#allocation6]  }
  0x2d   : > { %s31_s24 = sadd.s32 1, %s1987_s10  ;;  %s34_s26 = sadd.s32 1, %s1991_s11 }
  0x2e   : > { %p32_p13 = scmp.ge.s32.totalorder %s31_s24, 2  ;;  %s288_s27 = sand.u32 1, %s1975_s29  }
  0x2f   : > { %s1486_s13 = sshll.u32 %s288_s27, 6  ;;  %s1555_s18 = sshll.u32 %s1991_s11, 5 }
  0x30   : > { %s2481_s24 = smov (%p32_p13, %s31_s24), 0  ;;  %s2483_s26 = smov (!%p32_p13, %s34_s26), %s1991_s11 }
  0x31   : > { %2462 = sst [smem:[#allocation10_spill]] %s2481_s24  ;;  %s39_s20 = ssub.s32 %s1987_s10, %s2481_s24 }
  0x32   : > { %p36_p3 = scmp.ge.s32.totalorder %s2483_s26, 2  ;;  %s298_s22 = sadd.s32 %s1987_s10, %s1555_s18 }
  0x33   : > { %s292_s23 = scalar_lea.vmem [#allocation3], %s1486_s13  ;;  %s1489_s25 = sshll.u32 %s298_s22, 6 }
  0x34   : > { %s301_s19 = sshll.u32 %s292_s23, 4  ;;  %s2485_s26 = smov (%p36_p3, %s2483_s26), 0  ;;  %s2150_s19 = int_to_ptr.vmem [resolvable:$true] %s301_s19 }
  0x35   : > { %2463 = sst [smem:[#allocation11_spill]] %s2485_s26  ;;  %s38_s14 = ssub.s32 %s1991_s11, %s2485_s26 }
  0x36   : > { %s2157_s7 = scalar_lea.hbm %s2436_s0, %s1489_s25  ;;  %s40_s24 = sor.u32 %s39_s20, %s38_s14 }
  0x37   : > { %p41_p6 = scmp.eq.s32.totalorder %s40_s24, 0  ;;  %s2464_s13 = sadd.s32 1, %s1975_s29 }
  0x38   : > { %s2164_s23 = scalar_lea.sflag [#allocation4], %s288_s27  ;;  %s1895_s22 = scalar_lea.hbm %s2157_s7, 1024 }
  0x39   : > { %s2162_s18 = scalar_select %p41_p6, %s1975_s29, %s2464_s13  }
  0x3a   : > { %p1896_p8 = scmp.ne.s32.totalorder %s2157_s7, %s1895_s22  ;;  %p2465_p11 = scmp.ne.s32.totalorder %s2460_s21, 0 }
  0x3b   : > { %s1900_s25 = scalar_lea.hbm %s2436_s0, 4096  ;;  %p1901_p2 = scmp.lt.u32.totalorder %s2157_s7, %s2436_s0 }
  0x3c   : > { %p1897_p12 = pneg %p2465_p11  ;;  %p1902_p5 = scmp.lt.u32.totalorder %s1900_s25, %s1895_s22 }
  0x3d   : > { %p1904_p7 = scmp.lt.u32.totalorder %s1895_s22, %s2157_s7 }
  0x3e   : > { %p1898_p0 = pnand %p1897_p12, %p1896_p8  ;;  %p1903_p4 = por %p1902_p5, %p1901_p2 }
  0x40   : > { %p1899_p1 = pneg %p1898_p0  ;;  %p1905_p9 = por %p1904_p7, %p1903_p4 }
  0x42   : > { %p1906_p10 = pnand %p1905_p9, %p1899_p1 }
  0x44   : > { %1909 = shalt.err (!%p1906_p10)
}
  0x45   : > { %s1910_s24 = scalar_lea.vmem %s2150_s19, 1024  ;;  %s1998_s27 = smov [#allocation3]  }
  0x46   : > { %p1911_p13 = scmp.ne.s32.totalorder %s2150_s19, %s1910_s24  ;;  %s1915_s20 = sshll.u32 %s1998_s27, 4  ;;  %s1916_s20 = int_to_ptr.vmem [resolvable:$false] %s1915_s20 }
  0x47   : > { %s1917_s26 = scalar_lea.vmem %s1916_s20, 2048  ;;  %p1918_p8 = scmp.lt.s32.totalorder %s2150_s19, %s1916_s20 }
  0x48   : > { %p1913_p3 = pnand %p1911_p13, %p1897_p12  ;;  %p1919_p0 = scmp.lt.s32.totalorder %s1917_s26, %s1910_s24 }
  0x4a   : > { %p1914_p6 = pneg %p1913_p3  ;;  %p1920_p2 = por %p1919_p0, %p1918_p8 }
  0x4c   : > { %p1921_p5 = pnand %p1920_p2, %p1914_p6 }
  0x4e   : > { %1924 = shalt.err (!%p1921_p5)
}
  0x4f   : > { %s1999_s13 = smov 128   ;;  %s2000_s22 = smov 64  }
  0x50   : > { %s2001_s5 = smov 4   ;;  %p2466_p12 = scmp.ne.s32.totalorder %s2458_s17, 0 }
  0x51   : > { %1743 = dma.hbm_to_vmem [thread:$0]  (!%p2465_p11), %s2157_s7, 1024, %s2150_s19, %s2164_s23, %s1999_s13, %s2000_s22, %s2001_s5  }
  0x52   : > { %340 = sbr.rel (%p2466_p12) target bundleno = 814 (0x32e), region = 52  ;;  %s342_s12 = sand.u32 (!%p2466_p12), 1, %s1971_s28  }
  0x53   : > { %s1491_s25 = sshll.u32 (!%p2466_p12), %s342_s12, 6  ;;  %s343_s14 = scalar_lea.sflag (!%p2466_p12), [#allocation4], %s342_s12 }
  0x54   : > { %s2195_s24 = scalar_lea.vmem (!%p2466_p12), [#allocation3], %s1491_s25  ;;  %p2467_p1 = scmp.ne.s32.totalorder (!%p2466_p12), %s2457_s16, 0 }
  0x59   : > { %1958 = dma.done.wait (%p2467_p1), %s343_s14, 1024  }
  0x5a   : > { %1960 = vsyncadd (%p2467_p1), %s343_s14, 4294966272  ;;  %p2468_p4 = scmp.ne.s32.totalorder %s2456_s15, 0 }
  0x5c   : > { %1962 = dma.done.wait (%p2468_p4), [#allocation6], 16  }
  0x5d   : > { %1964 = vsyncadd (%p2468_p4), [#allocation6], 4294967280  ;;  %s1493_s7 = sshll.u32 %s1979_s30, 4  ;;  %s1495_s17 = sshll.u32 %s1983_s9, 4 }
  0x5e   : > { %p400_p11 = scmp.lt.s32.totalorder %s1493_s7, 31  ;;  %p406_p7 = scmp.lt.s32.totalorder %s1495_s17, 31 }
  0x5f   : > { %p1501_p9 = scmp.ne.s32.totalorder %s1979_s30, 0 }
  0x60   : > { %s2487_s7 = smov (!%p400_p11, %s1493_s7), 31  ;;  %s2489_s17 = smov (!%p406_p7, %s1495_s17), 31 }
  0x61   : > { %s1494_s21 = sshll.u32 %s2487_s7, 2  ;;  %s1496_s27 = sshll.u32 %s2489_s17, 3  ;;  %vm428_vm0 = vcmask (!%p1501_p9), 130048   ;;  %v2002_v0 = vmov (!%p1501_p9), 0.0  }
  0x62   : > { %s2210_s16 = scalar_lea.vmem %s2437_s1, %s1494_s21  ;;  %s2215_s15 = scalar_lea.vmem %s2438_s2, %s1496_s27  ;;  %429 = vst.msk [vmem:[#allocation2] sm:$0xff] (!%p1501_p9), %vm428_vm0, %v2002_v0  ;;  %430 = vst.msk [vmem:[#allocation2 + $0x8] sm:$0xff] (!%p1501_p9), %vm428_vm0, %v2002_v0 }
  0x63   : > { %s2220_s9 = scalar_lea.vmem %s2439_s3, %s1496_s27  ;;  %s2225_s25 = scalar_lea.vmem %s2444_s8, %s1496_s27  ;;  %431 = vst.msk [vmem:[#allocation2 + $0x10] sm:$0xff] (!%p1501_p9), %vm428_vm0, %v2002_v0  ;;  %432 = vst.msk [vmem:[#allocation2 + $0x18] sm:$0xff] (!%p1501_p9), %vm428_vm0, %v2002_v0 }
  0x64   : > { %427 = sbr.rel (%p1501_p9) target bundleno = 107 (0x6b), region = 64  ;;  %433 = vst.msk [vmem:[#allocation2 + $0x20] sm:$0xff] (!%p1501_p9), %vm428_vm0, %v2002_v0  ;;  %434 = vst.msk [vmem:[#allocation2 + $0x28] sm:$0xff] (!%p1501_p9), %vm428_vm0, %v2002_v0 }
  0x65   : > { %435 = vst.msk [vmem:[#allocation2 + $0x30] sm:$0xff] (!%p1501_p9), %vm428_vm0, %v2002_v0  ;;  %436 = vst.msk [vmem:[#allocation2 + $0x38] sm:$0xff] (!%p1501_p9), %vm428_vm0, %v2002_v0 }
  0x66   : > { %437 = vst.msk [vmem:[#allocation2 + $0x40] sm:$0xff] (!%p1501_p9), %vm428_vm0, %v2002_v0  ;;  %438 = vst.msk [vmem:[#allocation2 + $0x48] sm:$0xff] (!%p1501_p9), %vm428_vm0, %v2002_v0 }
  0x67   : > { %439 = vst.msk [vmem:[#allocation2 + $0x50] sm:$0xff] (!%p1501_p9), %vm428_vm0, %v2002_v0  ;;  %440 = vst.msk [vmem:[#allocation2 + $0x58] sm:$0xff] (!%p1501_p9), %vm428_vm0, %v2002_v0 }
  0x68   : > { %441 = vst.msk [vmem:[#allocation2 + $0x60] sm:$0xff] (!%p1501_p9), %vm428_vm0, %v2002_v0  ;;  %442 = vst.msk [vmem:[#allocation2 + $0x68] sm:$0xff] (!%p1501_p9), %vm428_vm0, %v2002_v0 }
  0x69   : > { %443 = vst.msk [vmem:[#allocation2 + $0x70] sm:$0xff] (!%p1501_p9), %vm428_vm0, %v2002_v0  ;;  %444 = vst.msk [vmem:[#allocation2 + $0x78] sm:$0xff] (!%p1501_p9), %vm428_vm0, %v2002_v0 }
  0x6b PF: > { %v1817_v1 = vld [vmem:[%s2210_s16] sm:$0xff]   ;;  %v1818_v2 = vld [vmem:[%s2210_s16 + $0x8] sm:$0xff]   ;;  %v1819_v3 = vld [vmem:[%s2210_s16 + $0x10] sm:$0xff]   ;;  %vm702_vm1 = vcmask 130048   ;;  %p1518_p10 = scmp.ne.s32.totalorder %s1979_s30, 1 }
  0x6c   : > { %1610 = vmatprep.subr.bf16.mxu0 %v1817_v1  ;;  %1714 = vmatprep.subr.bf16.mxu1 %v1817_v1  ;;  %v1820_v4 = vld [vmem:[%s2210_s16 + $0x18] sm:$0xff]   ;;  %v1825_v5 = vld [vmem:[%s2195_s24] sm:$0xff]   ;;  %v1822_v8 = vld [vmem:[%s2210_s16 + $0x28] sm:$0xff]   ;;  %vm903_vm2 = vcmask (!%p1518_p10), 261120   ;;  %s2469_s22 = sld [smem:[#allocation13_spill]] (!%p1518_p10) }
  0x6d   : > { %1611 = vmatpush3.bf16.msra.mxu0 %v1817_v1  ;;  %1722 = vmatpush3.bf16.msra.mxu1 %v1817_v1  ;;  %v1826_v6 = vld [vmem:[%s2195_s24 + $0x20] sm:$0xff]   ;;  %v1823_v9 = vld [vmem:[%s2210_s16 + $0x30] sm:$0xff]   ;;  %v1824_v10 = vld [vmem:[%s2210_s16 + $0x38] sm:$0xff]  }
  0x6e   : > { %1612 = vmatprep.subr.bf16.mxu0 %v1818_v2  ;;  %1715 = vmatprep.subr.bf16.mxu1 %v1818_v2  ;;  %v1821_v7 = vld [vmem:[%s2210_s16 + $0x20] sm:$0xff]   ;;  %v1827_v11 = vld [vmem:[%s2195_s24 + $0x8] sm:$0xff]   ;;  %v1829_v13 = vld [vmem:[%s2195_s24 + $0x10] sm:$0xff]  }
  0x6f   : > { %1626 = vmatprep.mubr.bf16.mxu0 %v1825_v5  ;;  %1634 = vmatprep.mubr.bf16.mxu1 %v1826_v6  ;;  %v1828_v12 = vld [vmem:[%s2195_s24 + $0x28] sm:$0xff]   ;;  %v1830_v14 = vld [vmem:[%s2195_s24 + $0x30] sm:$0xff]   ;;  %v1831_v15 = vld [vmem:[%s2195_s24 + $0x18] sm:$0xff]  }
  0x70   : > { %v1832_v16 = vld [vmem:[%s2195_s24 + $0x38] sm:$0xff]   ;;  %v447_v17 = vld [vmem:[#allocation2 + $0x10] sm:$0xff]  ;;  %v445_v19 = vld [vmem:[#allocation2] sm:$0xff] }
  0x71   : > { %1613 = vmatpush3.bf16.msra.mxu0 %v1818_v2  ;;  %1723 = vmatpush3.bf16.msra.mxu1 %v1818_v2  ;;  %v455_v18 = vld [vmem:[#allocation2 + $0x50] sm:$0xff]  ;;  %v453_v20 = vld [vmem:[#allocation2 + $0x40] sm:$0xff]  ;;  %v448_v23 = vld [vmem:[#allocation2 + $0x18] sm:$0xff] }
  0x72   : > { %1614 = vmatprep.subr.bf16.mxu0 %v1819_v3  ;;  %1716 = vmatprep.subr.bf16.mxu1 %v1819_v3  ;;  %v456_v24 = vld [vmem:[#allocation2 + $0x58] sm:$0xff]  ;;  %v446_v29 = vld [vmem:[#allocation2 + $0x8] sm:$0xff]  ;;  %v451_v41 = vld [vmem:[#allocation2 + $0x30] sm:$0xff] }
  0x73   : > { %v454_v30 = vld [vmem:[#allocation2 + $0x48] sm:$0xff]  ;;  %v459_v42 = vld [vmem:[#allocation2 + $0x70] sm:$0xff]  ;;  %v449_v43 = vld [vmem:[#allocation2 + $0x20] sm:$0xff] }
  0x74   : > { %v457_v44 = vld [vmem:[#allocation2 + $0x60] sm:$0xff]  ;;  %v452_v47 = vld [vmem:[#allocation2 + $0x38] sm:$0xff]  ;;  %v450_v53 = vld [vmem:[#allocation2 + $0x28] sm:$0xff] }
  0x75   : > { %1615 = vmatpush3.bf16.msra.mxu0 %v1819_v3  ;;  %1724 = vmatpush3.bf16.msra.mxu1 %v1819_v3  ;;  %v460_v48 = vld [vmem:[#allocation2 + $0x78] sm:$0xff]  ;;  %v458_v54 = vld [vmem:[#allocation2 + $0x68] sm:$0xff]  ;;  %v899_v1 = vld [vmem:[%s2440_s4] sm:$0xff] (!%p1518_p10) }
  0x76   : > { %1616 = vmatprep.subr.bf16.mxu0 %v1820_v4  ;;  %1717 = vmatprep.subr.bf16.mxu1 %v1820_v4  ;;  %v900_v2 = vld [vmem:[%s2440_s4 + $0x8] sm:$0xff] (!%p1518_p10)  ;;  %v901_v3 = vld [vmem:[%s2440_s4 + $0x10] sm:$0xff] (!%p1518_p10)  ;;  %v902_v5 = vld [vmem:[%s2440_s4 + $0x18] sm:$0xff] (!%p1518_p10) }
  0x77   : > { %v883_v6 = vld [vmem:[%s2215_s15] sm:$0xff] (!%p1518_p10) }
  0x79   : > { %1617 = vmatpush3.bf16.msra.mxu0 %v1820_v4  ;;  %1725 = vmatpush3.bf16.msra.mxu1 %v1820_v4  ;;  %v1702_v4 = vpack.c.bf16 (!%p1518_p10), %v900_v2, %v899_v1 }
  0x7a   : > { %1618 = vmatprep.subr.bf16.mxu0 %v1821_v7  ;;  %1718 = vmatprep.subr.bf16.mxu1 %v1821_v7 }
  0x7d   : > { %1619 = vmatpush3.bf16.msra.mxu0 %v1821_v7  ;;  %1726 = vmatpush3.bf16.msra.mxu1 %v1821_v7  ;;  %v2003_v7 = vmov (!%p1518_p10), 0  }
  0x7e   : > { %1620 = vmatprep.subr.bf16.mxu0 %v1822_v8  ;;  %1719 = vmatprep.subr.bf16.mxu1 %v1822_v8 }
  0x7f   : > { %1833 = vset.pattern.permute.xlu0 (!%p1518_p10), %v2003_v7  ;;  %1834 = vset.pattern.permute.xlu1 (!%p1518_p10), %v2003_v7 }
  0x81   : > { %1621 = vmatpush3.bf16.msra.mxu0 %v1822_v8  ;;  %1727 = vmatpush3.bf16.msra.mxu1 %v1822_v8  ;;  %v1706_v8 = vpack.c.bf16 (!%p1518_p10), %v902_v5, %v901_v3 }
  0x82   : > { %1622 = vmatprep.subr.bf16.mxu0 %v1823_v9  ;;  %1720 = vmatprep.subr.bf16.mxu1 %v1823_v9 }
  0x85   : > { %1623 = vmatpush3.bf16.msra.mxu0 %v1823_v9  ;;  %1728 = vmatpush3.bf16.msra.mxu1 %v1823_v9  ;;  %v739_v9 = vld [vmem:[%s2220_s9] sm:$0xff] (!%p1518_p10) }
  0x86   : > { %1624 = vmatprep.subr.bf16.mxu0 %v1824_v10  ;;  %1721 = vmatprep.subr.bf16.mxu1 %v1824_v10 }
  0x89   : > { %1625 = vmatpush3.bf16.msra.mxu0 %v1824_v10  ;;  %1729 = vmatpush3.bf16.msra.mxu1 %v1824_v10  ;;  %v755_v10 = vmax.f32 (!%p1518_p10), %v739_v9, 1.0 }
  0x8a   : > { %1703 = vmatprep.subr.bf16.mxu0 (!%p1518_p10), %v1702_v4 }
  0x8b   : > { %773 = vperm.xlu0 (!%p1518_p10), %1833, %v755_v10  }
  0x8c   : > { %1627 = vmatmul.mubr.bf16.vlgmr.msra.gmra.mrb[0].mxu0 %v1827_v11  ;;  %1635 = vmatmul.mubr.bf16.vlgmr.msra.gmra.mrb[0].mxu1 %v1828_v12  ;;  %v741_v11 = vld [vmem:[%s2220_s9 + $0x10] sm:$0xff] (!%p1518_p10)  ;;  %v740_v12 = vld [vmem:[%s2220_s9 + $0x8] sm:$0xff] (!%p1518_p10) }
  0x8d   : > { %1630 = vmatprep.mubr.bf16.mxu0 %v1829_v13  ;;  %1638 = vmatprep.mubr.bf16.mxu1 %v1830_v14  ;;  %v742_v13 = vld [vmem:[%s2220_s9 + $0x18] sm:$0xff] (!%p1518_p10)  ;;  %v884_v14 = vld [vmem:[%s2215_s15 + $0x8] sm:$0xff] (!%p1518_p10) }
  0x8e   : > { %1705 = vmatpush3.bf16.msra.mxu0 (!%p1518_p10), %v1702_v4 }
  0x8f   : > { %1707 = vmatprep.subr.bf16.mxu0 (!%p1518_p10), %v1706_v8 }
  0x92   : > { %1709 = vmatpush3.bf16.msra.mxu0 (!%p1518_p10), %v1706_v8 }
  0x94   : > { %1631 = vmatmul.mubr.bf16.gmra.mrb[4].mxu0 %v1831_v15  ;;  %1639 = vmatmul.mubr.bf16.gmra.mrb[4].mxu1 %v1832_v16  ;;  %v757_v15 = vmax.f32 (!%p1518_p10), %v741_v11, 1.0  ;;  %v885_v16 = vld [vmem:[%s2215_s15 + $0x10] sm:$0xff] (!%p1518_p10) }
  0x95   : > { %1650 = vmatprep.mubr.msk.f32.mxu0 (!%p1518_p10), %vm903_vm2, %v883_v6 }
  0x96   : > { %783 = vperm.xlu1 (!%p1518_p10), %1834, %v757_v15  }
 0x15f   : > { %v1628_v21 = vpop.f32.mrb[0].mxu0  ;;  %v1636_v22 = vpop.f32.mrb[0].mxu1 }
 0x160   : > { %v688_v25 = vadd.f32 %v1628_v21, %v447_v17  ;;  %v696_v26 = vadd.f32 %v1636_v22, %v455_v18  ;;  %v623_v27 = vpop.f32.mrb[1].mxu0  ;;  %v655_v28 = vpop.f32.mrb[1].mxu1  ;;  %v756_v17 = vmax.f32 (!%p1518_p10), %v740_v12, 1.0  ;;  %v758_v18 = vmax.f32 (!%p1518_p10), %v742_v13, 1.0  ;;  %1651 = vmatmul.mubr.msk.f32.vlgmr.msra.gmra.mrb[0].mxu0 (!%p1518_p10), %vm903_vm2, %v884_v14  ;;  %v886_v21 = vld [vmem:[%s2215_s15 + $0x18] sm:$0xff] (!%p1518_p10)  ;;  %v887_v22 = vld [vmem:[%s2215_s15 + $0x20] sm:$0xff] (!%p1518_p10) }
 0x161   : > { %v686_v31 = vadd.f32 %v623_v27, %v445_v19  ;;  %v694_v32 = vadd.f32 %v655_v28, %v453_v20  ;;  %v1629_v33 = vpop.f32.mrb[2].mxu0  ;;  %v1637_v34 = vpop.f32.mrb[2].mxu1  ;;  %v743_v19 = vld [vmem:[%s2220_s9 + $0x20] sm:$0xff] (!%p1518_p10)  ;;  %v744_v20 = vld [vmem:[%s2220_s9 + $0x28] sm:$0xff] (!%p1518_p10)  ;;  %1653 = vmatprep.mubr.msk.f32.mxu0 (!%p1518_p10), %vm903_vm2, %v885_v16  ;;  %v889_v28 = vld [vmem:[%s2215_s15 + $0x30] sm:$0xff] (!%p1518_p10) }
 0x162   : > { %705 = vst.msk [vmem:[#allocation2 + $0x10] sm:$0xff] %vm702_vm1, %v688_v25  ;;  %713 = vst.msk [vmem:[#allocation2 + $0x50] sm:$0xff] %vm702_vm1, %v696_v26  ;;  %v689_v35 = vadd.f32 %v1629_v33, %v448_v23  ;;  %v697_v36 = vadd.f32 %v1637_v34, %v456_v24  ;;  %v626_v37 = vpop.f32.mrb[3].mxu0  ;;  %v658_v38 = vpop.f32.mrb[3].mxu1  ;;  %778 = vperm.xlu0 (!%p1518_p10), %1833, %v756_v17   ;;  %v759_v23 = vmax.f32 (!%p1518_p10), %v743_v19, 1.0  ;;  %788 = vperm.xlu1 (!%p1518_p10), %1834, %v758_v18   ;;  %v745_v25 = vld [vmem:[%s2220_s9 + $0x30] sm:$0xff] (!%p1518_p10) }
 0x163   : > { %703 = vst.msk [vmem:[#allocation2] sm:$0xff] %vm702_vm1, %v686_v31  ;;  %711 = vst.msk [vmem:[#allocation2 + $0x40] sm:$0xff] %vm702_vm1, %v694_v32  ;;  %v687_v39 = vadd.f32 %v626_v37, %v446_v29  ;;  %v695_v40 = vadd.f32 %v658_v38, %v454_v30  ;;  %v760_v24 = vmax.f32 (!%p1518_p10), %v744_v20, 1.0  ;;  %v746_v26 = vld [vmem:[%s2220_s9 + $0x38] sm:$0xff] (!%p1518_p10)  ;;  %v888_v27 = vld [vmem:[%s2215_s15 + $0x28] sm:$0xff] (!%p1518_p10)  ;;  %v761_v29 = vmax.f32 (!%p1518_p10), %v745_v25, 1.0 }
 0x164   : > { %706 = vst.msk [vmem:[#allocation2 + $0x18] sm:$0xff] %vm702_vm1, %v689_v35  ;;  %714 = vst.msk [vmem:[#allocation2 + $0x58] sm:$0xff] %vm702_vm1, %v697_v36  ;;  %1654 = vmatmul.mubr.msk.f32.gmra.mrb[2].mxu0 (!%p1518_p10), %vm903_vm2, %v886_v21  ;;  %v762_v30 = vmax.f32 (!%p1518_p10), %v746_v26, 1.0  ;;  %v747_v31 = vld [vmem:[%s2220_s9 + $0x40] sm:$0xff] (!%p1518_p10)  ;;  %v748_v32 = vld [vmem:[%s2220_s9 + $0x48] sm:$0xff] (!%p1518_p10) }
 0x165   : > { %704 = vst.msk [vmem:[#allocation2 + $0x8] sm:$0xff] %vm702_vm1, %v687_v39  ;;  %712 = vst.msk [vmem:[#allocation2 + $0x48] sm:$0xff] %vm702_vm1, %v695_v40  ;;  %1656 = vmatprep.mubr.msk.f32.mxu0 (!%p1518_p10), %vm903_vm2, %v887_v22  ;;  %v890_v33 = vld [vmem:[%s2215_s15 + $0x38] sm:$0xff] (!%p1518_p10)  ;;  %v891_v34 = vld [vmem:[%s2215_s15 + $0x40] sm:$0xff] (!%p1518_p10)  ;;  %v763_v35 = vmax.f32 (!%p1518_p10), %v747_v31, 1.0  ;;  %v764_v36 = vmax.f32 (!%p1518_p10), %v748_v32, 1.0 }
 0x166   : > { %793 = vperm.xlu0 (!%p1518_p10), %1833, %v759_v23   ;;  %798 = vperm.xlu1 (!%p1518_p10), %1834, %v760_v24   ;;  %v749_v37 = vld [vmem:[%s2220_s9 + $0x50] sm:$0xff] (!%p1518_p10)  ;;  %v750_v38 = vld [vmem:[%s2220_s9 + $0x58] sm:$0xff] (!%p1518_p10)  ;;  %v892_v39 = vld [vmem:[%s2215_s15 + $0x48] sm:$0xff] (!%p1518_p10) }
 0x167   : > { %v1632_v45 = vpop.f32.mrb[4].mxu0  ;;  %v1640_v46 = vpop.f32.mrb[4].mxu1  ;;  %722 = sbr.rel (%p1518_p10) target bundleno = 814 (0x32e), region = 68  ;;  %v893_v40 = vld [vmem:[%s2215_s15 + $0x50] sm:$0xff] (!%p1518_p10)  ;;  %v2343_v18 = vld [vmem:[#allocation5] ss:$0 sm:$0xff] (!%p1518_p10) }
 0x168   : > { %v692_v49 = vadd.f32 %v1632_v45, %v451_v41  ;;  %v700_v50 = vadd.f32 %v1640_v46, %v459_v42  ;;  %v639_v51 = vpop.f32.mrb[5].mxu0  ;;  %v671_v52 = vpop.f32.mrb[5].mxu1  ;;  %1657 = vmatmul.mubr.msk.f32.gmra.mrb[4].mxu0 (!%p1518_p10), %vm903_vm2, %v888_v27  ;;  %v765_v41 = vmax.f32 (!%p1518_p10), %v749_v37, 1.0  ;;  %v766_v42 = vmax.f32 (!%p1518_p10), %v750_v38, 1.0  ;;  %v894_v45 = vld [vmem:[%s2215_s15 + $0x58] sm:$0xff] (!%p1518_p10)  ;;  %v895_v46 = vld [vmem:[%s2215_s15 + $0x60] sm:$0xff] (!%p1518_p10) }
 0x169   : > { %v690_v55 = vadd.f32 %v639_v51, %v449_v43  ;;  %v698_v56 = vadd.f32 %v671_v52, %v457_v44  ;;  %v1633_v57 = vpop.f32.mrb[6].mxu0  ;;  %v1641_v58 = vpop.f32.mrb[6].mxu1  ;;  %1659 = vmatprep.mubr.msk.f32.mxu0 (!%p1518_p10), %vm903_vm2, %v889_v28  ;;  %v751_v43 = vld [vmem:[%s2220_s9 + $0x60] sm:$0xff] (!%p1518_p10)  ;;  %v752_v44 = vld [vmem:[%s2220_s9 + $0x68] sm:$0xff] (!%p1518_p10)  ;;  %v897_v52 = vld [vmem:[%s2215_s15 + $0x70] sm:$0xff] (!%p1518_p10) }
 0x16a   : > { %709 = vst.msk [vmem:[#allocation2 + $0x30] sm:$0xff] %vm702_vm1, %v692_v49  ;;  %717 = vst.msk [vmem:[#allocation2 + $0x70] sm:$0xff] %vm702_vm1, %v700_v50  ;;  %v693_v59 = vadd.f32 %v1633_v57, %v452_v47  ;;  %v701_v60 = vadd.f32 %v1641_v58, %v460_v48  ;;  %v642_v61 = vpop.f32.mrb[7].mxu0  ;;  %v674_v62 = vpop.f32.mrb[7].mxu1  ;;  %803 = vperm.xlu0 (!%p1518_p10), %1833, %v761_v29   ;;  %808 = vperm.xlu1 (!%p1518_p10), %1834, %v762_v30   ;;  %v767_v47 = vmax.f32 (!%p1518_p10), %v751_v43, 1.0  ;;  %v753_v49 = vld [vmem:[%s2220_s9 + $0x70] sm:$0xff] (!%p1518_p10) }
 0x16b   : > { %707 = vst.msk [vmem:[#allocation2 + $0x20] sm:$0xff] %vm702_vm1, %v690_v55  ;;  %715 = vst.msk [vmem:[#allocation2 + $0x60] sm:$0xff] %vm702_vm1, %v698_v56  ;;  %v691_v63 = vadd.f32 %v642_v61, %v450_v53  ;;  %v699_v0 = vadd.f32 %v674_v62, %v458_v54  ;;  %v768_v48 = vmax.f32 (!%p1518_p10), %v752_v44, 1.0  ;;  %v754_v50 = vld [vmem:[%s2220_s9 + $0x78] sm:$0xff] (!%p1518_p10)  ;;  %v896_v51 = vld [vmem:[%s2215_s15 + $0x68] sm:$0xff] (!%p1518_p10)  ;;  %v769_v53 = vmax.f32 (!%p1518_p10), %v753_v49, 1.0 }
 0x16c   : > { %710 = vst.msk [vmem:[#allocation2 + $0x38] sm:$0xff] %vm702_vm1, %v693_v59  ;;  %718 = vst.msk [vmem:[#allocation2 + $0x78] sm:$0xff] %vm702_vm1, %v701_v60  ;;  %1660 = vmatmul.mubr.msk.f32.gmra.mrb[6].mxu0 (!%p1518_p10), %vm903_vm2, %v890_v33  ;;  %v770_v54 = vmax.f32 (!%p1518_p10), %v754_v50, 1.0  ;;  %v898_v55 = vld [vmem:[%s2215_s15 + $0x78] sm:$0xff] (!%p1518_p10)  ;;  %v1136_v56 = vld [vmem:[%s2442_s6] sm:$0xff] (!%p1518_p10)  ;;  %v784_v59 = vpop.permute.xlu1 (!%p1518_p10), %783  ;;  %v774_v60 = vpop.permute.xlu0 (!%p1518_p10), %773 }
 0x16d   : > { %708 = vst.msk [vmem:[#allocation2 + $0x28] sm:$0xff] %vm702_vm1, %v691_v63  ;;  %716 = vst.msk [vmem:[#allocation2 + $0x68] sm:$0xff] %vm702_vm1, %v699_v0  ;;  %1662 = vmatprep.mubr.msk.f32.mxu0 (!%p1518_p10), %vm903_vm2, %v891_v34  ;;  %v1137_v57 = vld [vmem:[%s2442_s6 + $0x8] sm:$0xff] (!%p1518_p10)  ;;  %v723_v8 = vld [vmem:[#allocation2] sm:$0xff] (!%p1518_p10) }
 0x16e   : > { %813 = vperm.xlu0 %1833, %v763_v35   ;;  %818 = vperm.xlu1 %1834, %v764_v36   ;;  %v1710_v58 = vpack.c.bf16 %v1137_v57, %v1136_v56  ;;  %v724_v6 = vld [vmem:[#allocation2 + $0x8] sm:$0xff]  ;;  %v726_v15 = vld [vmem:[#allocation2 + $0x18] sm:$0xff]  ;;  %v725_v20 = vld [vmem:[#allocation2 + $0x10] sm:$0xff] }
 0x170   : > { %1663 = vmatmul.mubr.msk.f32.gmra.mrb[8].mxu0 %vm903_vm2, %v892_v39  ;;  %1711 = vmatprep.subr.bf16.mxu1 %v1710_v58 }
 0x171   : > { %1665 = vmatprep.mubr.msk.f32.mxu0 %vm903_vm2, %v893_v40  ;;  %1713 = vmatpush3.bf16.msra.mxu1 %v1710_v58 }
 0x172   : > { %823 = vperm.xlu0 %1833, %v765_v41   ;;  %828 = vperm.xlu1 %1834, %v766_v42   ;;  %v727_v33 = vld [vmem:[#allocation2 + $0x20] sm:$0xff] }
 0x173   : > { %v730_v41 = vld [vmem:[#allocation2 + $0x38] sm:$0xff] }
 0x174   : > { %1666 = vmatmul.mubr.msk.f32.gmra.mrb[10].mxu0 %vm903_vm2, %v894_v45  ;;  %v728_v27 = vld [vmem:[#allocation2 + $0x28] sm:$0xff] }
 0x175   : > { %1668 = vmatprep.mubr.msk.f32.mxu0 %vm903_vm2, %v895_v46  ;;  %v729_v46 = vld [vmem:[#allocation2 + $0x30] sm:$0xff] }
 0x176   : > { %833 = vperm.xlu0 %1833, %v767_v47   ;;  %838 = vperm.xlu1 %1834, %v768_v48  }
 0x178   : > { %1669 = vmatmul.mubr.msk.f32.gmra.mrb[12].mxu0 %vm903_vm2, %v896_v51 }
 0x179   : > { %1671 = vmatprep.mubr.msk.f32.mxu0 %vm903_vm2, %v897_v52 }
 0x17a   : > { %843 = vperm.xlu0 %1833, %v769_v53   ;;  %848 = vperm.xlu1 %1834, %v770_v54  }
 0x17c   : > { %1672 = vmatmul.mubr.msk.f32.gmra.mrb[14].mxu0 %vm903_vm2, %v898_v55  ;;  %v732_v55 = vld [vmem:[#allocation2 + $0x48] sm:$0xff] }
 0x1e1   : > { %v789_v61 = vpop.permute.xlu1 %788  ;;  %v779_v62 = vpop.permute.xlu0 %778 }
 0x1e2   : > { %1835 = vrcp.f32 %v779_v62 }
 0x1e3   : > { %1837 = vrcp.f32 %v774_v60  ;;  %v731_v60 = vld [vmem:[#allocation2 + $0x40] sm:$0xff] }
 0x1e4   : > { %1839 = vrcp.f32 %v789_v61 }
 0x1e5   : > { %v799_v63 = vpop.permute.xlu1 %798  ;;  %v794_v0 = vpop.permute.xlu0 %793  ;;  %1841 = vrcp.f32 %v784_v59 }
 0x1e6   : > { %1843 = vrcp.f32 %v799_v63 }
 0x1e7   : > { %1845 = vrcp.f32 %v794_v0 }
 0x1e9   : > { %v809_v1 = vpop.permute.xlu1 %808  ;;  %v804_v2 = vpop.permute.xlu0 %803 }
 0x1ea   : > { %1847 = vrcp.f32 %v809_v1 }
 0x1eb   : > { %1849 = vrcp.f32 %v804_v2 }
 0x1ec   : > { %v1836_v5 = vpop.eup %1835 }
 0x1ed   : > { %v819_v3 = vpop.permute.xlu1 %818  ;;  %v814_v4 = vpop.permute.xlu0 %813  ;;  %v854_v10 = vmul.f32 %v1836_v5, %v724_v6 }
 0x1ee   : > { %v1838_v7 = vpop.eup %1837  ;;  %1851 = vrcp.f32 %v819_v3  ;;  %v734_v3 = vld [vmem:[#allocation2 + $0x58] sm:$0xff] }
 0x1ef   : > { %v1840_v11 = vpop.eup %1839  ;;  %v852_v14 = vmul.f32 %v1838_v7, %v723_v8  ;;  %1853 = vrcp.f32 %v814_v4  ;;  %v733_v8 = vld [vmem:[#allocation2 + $0x50] sm:$0xff] }
 0x1f0   : > { %v1842_v16 = vpop.eup %1841  ;;  %v858_v22 = vmul.f32 %v1840_v11, %v726_v15  ;;  %v736_v15 = vld [vmem:[#allocation2 + $0x68] sm:$0xff] }
 0x1f1   : > { %v829_v9 = vpop.permute.xlu1 %828  ;;  %v824_v12 = vpop.permute.xlu0 %823  ;;  %v856_v25 = vmul.f32 %v1842_v16, %v725_v20 }
 0x1f2   : > { %v1844_v23 = vpop.eup %1843  ;;  %1855 = vrcp.f32 %v829_v9 }
 0x1f3   : > { %v1846_v28 = vpop.eup %1845  ;;  %1857 = vrcp.f32 %v824_v12  ;;  %v862_v36 = vmul.f32 %v1844_v23, %v728_v27 }
 0x1f4   : > { %v1848_v37 = vpop.eup %1847  ;;  %v860_v40 = vmul.f32 %v1846_v28, %v727_v33  ;;  %v738_v28 = vld [vmem:[#allocation2 + $0x78] sm:$0xff]  ;;  %v737_v33 = vld [vmem:[#allocation2 + $0x70] sm:$0xff] }
 0x1f5   : > { %v839_v29 = vpop.permute.xlu1 %838  ;;  %v834_v34 = vpop.permute.xlu0 %833  ;;  %v866_v49 = vmul.f32 %v1848_v37, %v730_v41 }
 0x1f6   : > { %v1850_v42 = vpop.eup %1849  ;;  %1859 = vrcp.f32 %v839_v29 }
 0x1f7   : > { %1861 = vrcp.f32 %v834_v34  ;;  %v864_v54 = vmul.f32 %v1850_v42, %v729_v46 }
 0x1f8   : > { %v1852_v50 = vpop.eup %1851 }
 0x1f9   : > { %v849_v48 = vpop.permute.xlu1 %848  ;;  %v844_v51 = vpop.permute.xlu0 %843  ;;  %v870_v62 = vmul.f32 %v1852_v50, %v732_v55 }
 0x1fa   : > { %v1854_v56 = vpop.eup %1853  ;;  %1863 = vrcp.f32 %v849_v48 }
 0x1fb   : > { %1865 = vrcp.f32 %v844_v51  ;;  %v868_v2 = vmul.f32 %v1854_v56, %v731_v60 }
 0x1fc   : > { %v1856_v63 = vpop.eup %1855 }
 0x1fd   : > { %v1858_v4 = vpop.eup %1857 }
 0x200   : > { %v1860_v11 = vpop.eup %1859 }
 0x201   : > { %v1862_v16 = vpop.eup %1861  ;;  %v878_v23 = vmul.f32 %v1860_v11, %v736_v15 }
 0x233   : > { %v1652_v13 = vpop.f32.mrb[0].mxu0 }
 0x234   : > { %v1098_v17 = vadd.f32 %v1652_v13, %v854_v10  ;;  %v1018_v19 = vpop.f32.mrb[1].mxu0  ;;  %v874_v10 = vmul.f32 %v1856_v63, %v734_v3 }
 0x235   : > { %v1097_v21 = vadd.f32 %v1018_v19, %v852_v14  ;;  %v872_v14 = vmul.f32 %v1858_v4, %v733_v8 }
 0x236   : > { %v1121_v30 = vadd.f32 %v2343_v18, %v1098_v17 }
 0x237   : > { %v1655_v24 = vpop.f32.mrb[2].mxu0  ;;  %v1120_v26 = vadd.f32 %v2343_v18, %v1097_v21  ;;  %v735_v21 = vld [vmem:[#allocation2 + $0x60] sm:$0xff] }
 0x238   : > { %v1100_v31 = vadd.f32 %v1655_v24, %v858_v22  ;;  %v1028_v32 = vpop.f32.mrb[3].mxu0  ;;  %v1864_v24 = vpop.eup %1863  ;;  %v876_v27 = vmul.f32 %v1862_v16, %v735_v21 }
 0x239   : > { %v1099_v35 = vadd.f32 %v1028_v32, %v856_v25  ;;  %1678 = vmatprep.mubr.msk.f32.mxu1 %vm702_vm1, %v1120_v26  ;;  %v1866_v29 = vpop.eup %1865 }
 0x23a   : > { %1679 = vmatmul.mubr.msk.f32.vlgmr.msra.gmra.mrb[0].mxu1 %vm702_vm1, %v1121_v30  ;;  %v1123_v43 = vadd.f32 %v2343_v18, %v1100_v31 }
 0x23b   : > { %v1122_v38 = vadd.f32 %v2343_v18, %v1099_v35  ;;  %v1658_v39 = vpop.f32.mrb[4].mxu0  ;;  %v882_v35 = vmul.f32 %v1864_v24, %v738_v28 }
 0x23c   : > { %v1102_v44 = vadd.f32 %v1658_v39, %v862_v36  ;;  %v1038_v45 = vpop.f32.mrb[5].mxu0 }
 0x23d   : > { %v1101_v47 = vadd.f32 %v1038_v45, %v860_v40  ;;  %1681 = vmatprep.mubr.msk.f32.mxu1 %vm702_vm1, %v1122_v38  ;;  %v880_v38 = vmul.f32 %v1866_v29, %v737_v33  ;;  %v1536_v45 = vld [vmem:[%s2469_s22] ss:$0 sm:$0xff] }
 0x23e   : > { %1682 = vmatmul.mubr.msk.f32.gmra.mrb[2].mxu1 %vm702_vm1, %v1123_v43  ;;  %v1125_v57 = vadd.f32 %v2343_v18, %v1102_v44 }
 0x23f   : > { %v1124_v52 = vadd.f32 %v2343_v18, %v1101_v47  ;;  %v1661_v53 = vpop.f32.mrb[6].mxu0 }
 0x240   : > { %v1104_v58 = vadd.f32 %v1661_v53, %v866_v49  ;;  %v1048_v59 = vpop.f32.mrb[7].mxu0 }
 0x241   : > { %v1103_v61 = vadd.f32 %v1048_v59, %v864_v54  ;;  %1684 = vmatprep.mubr.msk.f32.mxu1 %vm702_vm1, %v1124_v52 }
 0x242   : > { %1685 = vmatmul.mubr.msk.f32.gmra.mrb[4].mxu1 %vm702_vm1, %v1125_v57  ;;  %v1127_v5 = vadd.f32 %v2343_v18, %v1104_v58 }
 0x243   : > { %v1126_v0 = vadd.f32 %v2343_v18, %v1103_v61  ;;  %v1664_v1 = vpop.f32.mrb[8].mxu0 }
 0x244   : > { %v1106_v6 = vadd.f32 %v1664_v1, %v870_v62  ;;  %v1058_v7 = vpop.f32.mrb[9].mxu0 }
 0x245   : > { %v1105_v9 = vadd.f32 %v1058_v7, %v868_v2  ;;  %1687 = vmatprep.mubr.msk.f32.mxu1 %vm702_vm1, %v1126_v0 }
 0x246   : > { %1688 = vmatmul.mubr.msk.f32.gmra.mrb[6].mxu1 %vm702_vm1, %v1127_v5  ;;  %v1129_v17 = vadd.f32 %v2343_v18, %v1106_v6 }
 0x247   : > { %v1128_v12 = vadd.f32 %v2343_v18, %v1105_v9  ;;  %v1667_v13 = vpop.f32.mrb[10].mxu0 }
 0x248   : > { %v1108_v19 = vadd.f32 %v1667_v13, %v874_v10  ;;  %v1068_v20 = vpop.f32.mrb[11].mxu0 }
 0x249   : > { %v1107_v22 = vadd.f32 %v1068_v20, %v872_v14  ;;  %1690 = vmatprep.mubr.msk.f32.mxu1 %vm702_vm1, %v1128_v12 }
 0x24a   : > { %1691 = vmatmul.mubr.msk.f32.gmra.mrb[8].mxu1 %vm702_vm1, %v1129_v17  ;;  %v1131_v30 = vadd.f32 %v2343_v18, %v1108_v19 }
 0x24b   : > { %v1130_v25 = vadd.f32 %v2343_v18, %v1107_v22  ;;  %v1670_v26 = vpop.f32.mrb[12].mxu0 }
 0x24c   : > { %v1110_v31 = vadd.f32 %v1670_v26, %v878_v23  ;;  %v1078_v32 = vpop.f32.mrb[13].mxu0 }
 0x24d   : > { %v1109_v34 = vadd.f32 %v1078_v32, %v876_v27  ;;  %1693 = vmatprep.mubr.msk.f32.mxu1 %vm702_vm1, %v1130_v25 }
 0x24e   : > { %1694 = vmatmul.mubr.msk.f32.gmra.mrb[10].mxu1 %vm702_vm1, %v1131_v30  ;;  %v1133_v39 = vadd.f32 %v2343_v18, %v1110_v31 }
 0x24f   : > { %v1132_v36 = vadd.f32 %v2343_v18, %v1109_v34  ;;  %v1673_v37 = vpop.f32.mrb[14].mxu0 }
 0x250   : > { %v1112_v40 = vadd.f32 %v1673_v37, %v882_v35  ;;  %v1088_v41 = vpop.f32.mrb[15].mxu0 }
 0x251   : > { %v1111_v42 = vadd.f32 %v1088_v41, %v880_v38  ;;  %1696 = vmatprep.mubr.msk.f32.mxu1 %vm702_vm1, %v1132_v36 }
 0x252   : > { %1697 = vmatmul.mubr.msk.f32.gmra.mrb[12].mxu1 %vm702_vm1, %v1133_v39  ;;  %v1135_v44 = vadd.f32 %v2343_v18, %v1112_v40 }
 0x253   : > { %v1134_v43 = vadd.f32 %v2343_v18, %v1111_v42 }
 0x255   : > { %1699 = vmatprep.mubr.msk.f32.mxu1 %vm702_vm1, %v1134_v43 }
 0x256   : > { %1700 = vmatmul.mubr.msk.f32.gmra.mrb[14].mxu1 %vm702_vm1, %v1135_v44 }
 0x30d   : > { %v1680_v46 = vpop.f32.mrb[0].mxu1 }
 0x30e   : > { %v1265_v47 = vadd.f32 %v1680_v46, %v1536_v45  ;;  %v1259_v48 = vpop.f32.mrb[1].mxu1 }
 0x30f   : > { %v1260_v49 = vadd.f32 %v1536_v45, %v1259_v48 }
 0x310   : > { %1339 = vst.msk [vmem:[%s2225_s25 + $0x8] sm:$0xff] %vm702_vm1, %v1265_v47 }
 0x311   : > { %1338 = vst.msk [vmem:[%s2225_s25] sm:$0xff] %vm702_vm1, %v1260_v49  ;;  %v1683_v50 = vpop.f32.mrb[2].mxu1 }
 0x312   : > { %v1275_v18 = vadd.f32 %v1683_v50, %v1536_v45  ;;  %v1269_v51 = vpop.f32.mrb[3].mxu1 }
 0x313   : > { %v1270_v52 = vadd.f32 %v1536_v45, %v1269_v51 }
 0x314   : > { %1341 = vst.msk [vmem:[%s2225_s25 + $0x18] sm:$0xff] %vm702_vm1, %v1275_v18 }
 0x315   : > { %1340 = vst.msk [vmem:[%s2225_s25 + $0x10] sm:$0xff] %vm702_vm1, %v1270_v52  ;;  %v1686_v53 = vpop.f32.mrb[4].mxu1 }
 0x316   : > { %v1285_v54 = vadd.f32 %v1686_v53, %v1536_v45  ;;  %v1279_v55 = vpop.f32.mrb[5].mxu1 }
 0x317   : > { %v1280_v56 = vadd.f32 %v1536_v45, %v1279_v55 }
 0x318   : > { %1343 = vst.msk [vmem:[%s2225_s25 + $0x28] sm:$0xff] %vm702_vm1, %v1285_v54 }
 0x319   : > { %1342 = vst.msk [vmem:[%s2225_s25 + $0x20] sm:$0xff] %vm702_vm1, %v1280_v56  ;;  %v1689_v57 = vpop.f32.mrb[6].mxu1 }
 0x31a   : > { %v1295_v58 = vadd.f32 %v1689_v57, %v1536_v45  ;;  %v1289_v59 = vpop.f32.mrb[7].mxu1 }
 0x31b   : > { %v1290_v60 = vadd.f32 %v1536_v45, %v1289_v59 }
 0x31c   : > { %1345 = vst.msk [vmem:[%s2225_s25 + $0x38] sm:$0xff] %vm702_vm1, %v1295_v58 }
 0x31d   : > { %1344 = vst.msk [vmem:[%s2225_s25 + $0x30] sm:$0xff] %vm702_vm1, %v1290_v60  ;;  %v1692_v61 = vpop.f32.mrb[8].mxu1 }
 0x31e   : > { %v1305_v62 = vadd.f32 %v1692_v61, %v1536_v45  ;;  %v1299_v63 = vpop.f32.mrb[9].mxu1 }
 0x31f   : > { %v1300_v0 = vadd.f32 %v1536_v45, %v1299_v63 }
 0x320   : > { %1347 = vst.msk [vmem:[%s2225_s25 + $0x48] sm:$0xff] %vm702_vm1, %v1305_v62 }
 0x321   : > { %1346 = vst.msk [vmem:[%s2225_s25 + $0x40] sm:$0xff] %vm702_vm1, %v1300_v0  ;;  %v1695_v1 = vpop.f32.mrb[10].mxu1 }
 0x322   : > { %v1315_v2 = vadd.f32 %v1695_v1, %v1536_v45  ;;  %v1309_v3 = vpop.f32.mrb[11].mxu1 }
 0x323   : > { %v1310_v4 = vadd.f32 %v1536_v45, %v1309_v3 }
 0x324   : > { %1349 = vst.msk [vmem:[%s2225_s25 + $0x58] sm:$0xff] %vm702_vm1, %v1315_v2 }
 0x325   : > { %1348 = vst.msk [vmem:[%s2225_s25 + $0x50] sm:$0xff] %vm702_vm1, %v1310_v4  ;;  %v1698_v5 = vpop.f32.mrb[12].mxu1 }
 0x326   : > { %v1325_v6 = vadd.f32 %v1698_v5, %v1536_v45  ;;  %v1319_v7 = vpop.f32.mrb[13].mxu1 }
 0x327   : > { %v1320_v8 = vadd.f32 %v1536_v45, %v1319_v7 }
 0x328   : > { %1351 = vst.msk [vmem:[%s2225_s25 + $0x68] sm:$0xff] %vm702_vm1, %v1325_v6 }
 0x329   : > { %1350 = vst.msk [vmem:[%s2225_s25 + $0x60] sm:$0xff] %vm702_vm1, %v1320_v8  ;;  %v1701_v9 = vpop.f32.mrb[14].mxu1 }
 0x32a   : > { %v1335_v10 = vadd.f32 %v1701_v9, %v1536_v45  ;;  %v1329_v11 = vpop.f32.mrb[15].mxu1 }
 0x32b   : > { %v1330_v12 = vadd.f32 %v1536_v45, %v1329_v11 }
 0x32c   : > { %1353 = vst.msk [vmem:[%s2225_s25 + $0x78] sm:$0xff] %vm702_vm1, %v1335_v10 }
 0x32d   : > { %1352 = vst.msk [vmem:[%s2225_s25 + $0x70] sm:$0xff] %vm702_vm1, %v1330_v12 }
 0x32e PF: > { %s2470_s9 = sld [smem:[#allocation9_spill]]  ;;  %s2471_s5 = sld [smem:[#allocation10_spill]] }
 0x32f   : > { %s2472_s14 = sld [smem:[#allocation11_spill]]  ;;  %s2473_s27 = smov %s1971_s28 }
 0x330   : > { %s2474_s28 = smov %s1975_s29  ;;  %s2475_s29 = smov %s2162_s18 }
 0x331   : > { %s2476_s30 = smov %s1987_s10 }
 0x334   : > { %s22_s12 = sadd.s32 1, %s2470_s9   ;;  %s2477_s9 = smov %s1991_s11 }
 0x335   : > { %p19_p13 = scmp.ge.s32.totalorder %s22_s12, 6   ;;  %s2478_s10 = smov %s2471_s5 }
 0x336   : > { %s2479_s11 = smov %s2472_s14 }
 0x337   :  { %21 = sbr.rel (!%p19_p13) target bundleno = 9 (0x9), region = 113 }
 0x33e   :  { %1376 = vsyncpa [#allocation4], 1 }
 0x33f   :  { %1378 = vsyncpa [#allocation4 + $0x1], 1 }
 0x340   :  { %1379 = vsyncpa [#allocation6], 1 }

</bundles_post_ra>
